<compile_context>
chip_gen: v6e
topology: v6e:2x2x1
jax: 0.10.0
libtpu: 0.0.40
codegen_flags: <defaults>
</compile_context>

<pallas_src>
import functools

import jax
import jax.numpy as jnp
import numpy as np
from jax import lax
from jax.experimental import pallas as pl
from jax.experimental.pallas import tpu as pltpu


def _conv_out_len(t, stride):
    # Conv with odd kernel K and padding K//2: out = floor((t-1)/stride) + 1
    return (t - 1) // stride + 1


def _read_rows(ref, start, n, stride):
    """Read n rows starting at `start`, every `stride`-th row, from a 2D VMEM ref."""
    if stride == 1:
        return ref[pl.ds(start, n), :]
    # TODO(synk): for stride>1 a de-interleaved (even/odd row bank) activation layout would make these
    #             tap reads contiguous vlds; only worth it once a bundle dump shows the XLU binding.
    return ref[pl.ds(start, n, stride), :]


# --------------------------------------------------------------------------------------
# Fused kernel: conv1+SiLU+pool -> conv2+SiLU -> conv3+SiLU -> linear -> LayerNorm
# (NB batch items lane-packed per grid step; block-diagonal weights built host-side.)
# --------------------------------------------------------------------------------------
def _vgg_fused_kernel(x_ref, w1_ref, b1_ref, w2_ref, b2_ref, w3_ref, b3_ref,
                      lw_ref, lb_ref, mavg_ref, g_ref, beta_ref, o_ref,
                      xp_ref, a1p_ref, a2p_ref, *,
                      K, pad, P, T, T1, T2, T3, s1, s2, s3, WB, eps):
    f32 = jnp.float32
    bf16 = jnp.bfloat16

    # Zero only the time-pad halo rows (interiors are fully overwritten each step; feature padding is
    # folded into the Toeplitz weights so there are no pad columns). Re-zeroed every step so the
    # "parallel" batch axis is safe on v7x megacore.
    if pad:
        for ref, t_int in ((xp_ref, T), (a1p_ref, T1), (a2p_ref, T2)):
            z = jnp.zeros((pad, ref.shape[1]), f32)
            ref[pl.ds(0, pad), :] = z
            ref[pl.ds(t_int + pad, pad), :] = z

    # Stage 0: stash the time-padded, lane-packed input (T + 2*pad, NB*F).
    xp_ref[pl.ds(pad, T), :] = x_ref[0]

    def conv_silu(in_ref, w_ref, b_ref, t_out, stride):
        # K time-tap matmuls against bf16 block-Toeplitz weights, f32 accumulation.
        acc = jnp.zeros((t_out, w_ref.shape[2]), f32)
        for kt in range(K):
            rows = _read_rows(in_ref, kt, t_out, stride).astype(bf16)
            acc = acc + jnp.dot(rows, w_ref[kt], preferred_element_type=f32)
        acc = acc + b_ref[...]
        return acc * jax.nn.sigmoid(acc)                      # SiLU

    # Stage 1: conv1 + SiLU + feature max-pool.
    # conv1 output lane order is pool-phase-major over the whole packed row:
    #   col = p*(NB*F1*C1) + nb*(F1*C1) + f1*C1 + c
    # so pooling is an elementwise max over P contiguous lane blocks of width WB = NB*F1*C1 (>=128).
    a1 = conv_silu(xp_ref, w1_ref, b1_ref, T1, s1)            # (T1, P*WB)
    pooled = a1[:, 0:WB]
    for p_ in range(1, P):
        pooled = jnp.maximum(pooled, a1[:, p_ * WB:(p_ + 1) * WB])
    a1p_ref[pl.ds(pad, T1), :] = pooled                       # lane offset 0, full width

    # Stage 2: conv2 + SiLU (feature pad folded into weights).
    a2p_ref[pl.ds(pad, T2), :] = conv_silu(a1p_ref, w2_ref, b2_ref, T2, s2)

    # Stage 3: conv3 + SiLU. Output is already the flattened per-item (f1-major, c-minor) layout.
    a3 = conv_silu(a2p_ref, w3_ref, b3_ref, T3, s3)           # (T3, NB*F1*C3)

    # Stage 4: linear (dropout = identity at eval / p=0) + per-item LayerNorm.
    # Per-item mean/var are computed with a block-diagonal averaging matmul (f32) so the whole
    # (T3, NB*L) row stays lane-dense and is stored with a single unmasked store.
    y = jnp.dot(a3.astype(bf16), lw_ref[...], preferred_element_type=f32) + lb_ref[...]
    mean = jnp.dot(y, mavg_ref[...], preferred_element_type=f32)
    d = y - mean
    var = jnp.dot(d * d, mavg_ref[...], preferred_element_type=f32)
    o_ref[0] = (d * lax.rsqrt(var + eps)) * g_ref[...] + beta_ref[...]


# --------------------------------------------------------------------------------------
# Host-side weight preparation (done once; zero runtime cost in the forward pass)
# --------------------------------------------------------------------------------------
def prepare_params(tp, cfg, nb=4):
    F = cfg["num_inputs"]
    P = cfg["pool_size"]
    F1 = F // P
    K = cfg["conv_kernel_size"]
    pad = K // 2
    C1, C2, C3 = cfg["conv1_channels"], cfg["conv2_channels"], cfg["conv3_channels"]
    L = cfg["linear_size"]
    WB = nb * F1 * C1

    def block_diag(m):
        r, c = m.shape
        out = np.zeros((nb * r, nb * c), m.dtype)
        for b in range(nb):
            out[b * r:(b + 1) * r, b * c:(b + 1) * c] = m
        return out

    # conv1: time-only conv (kernel (K,1), 1 -> C1 channels). Output lane order is pool-phase-major
    # over the packed row: col = p*(NB*F1*C1) + nb*(F1*C1) + f1*C1 + c.
    w1 = np.transpose(np.asarray(tp["w1_t"], np.float32)[:, 0, :, 0], (1, 0))     # (K, C1)
    w1_big = np.zeros((K, nb * F, P * WB), np.float32)
    for kt in range(K):
        for b in range(nb):
            for f in range(F):
                f1, p = f // P, f % P
                if f1 >= F1:
                    continue  # torch MaxPool2d floor mode drops trailing features
                col0 = p * WB + b * (F1 * C1) + f1 * C1
                w1_big[kt, b * F + f, col0:col0 + C1] = w1[kt]
    b1_big = np.tile(np.asarray(tp["b1"], np.float32), P * nb * F1)[None, :]

    # conv2/conv3: block-Toeplitz over features WITHOUT feature padding (out-of-range taps dropped,
    # i.e. the zero feature border is folded into the weight), block-diagonal over batch items.
    def conv_toeplitz(w_t, cin, cout):
        w = np.transpose(np.asarray(w_t, np.float32), (2, 3, 1, 0))               # (K, K, Cin, Cout)
        wb = np.zeros((K, F1 * cin, F1 * cout), np.float32)
        for kt in range(K):
            for f in range(F1):
                for kf in range(K):
                    fin = f + kf - pad
                    if fin < 0 or fin >= F1:
                        continue                                                  # zero padding
                    wb[kt, fin * cin:(fin + 1) * cin, f * cout:(f + 1) * cout] = w[kt, kf]
        return wb

    w2_pi = conv_toeplitz(tp["w2_t"], C1, C2)
    w3_pi = conv_toeplitz(tp["w3_t"], C2, C3)
    w2_big = np.stack([block_diag(w2_pi[kt]) for kt in range(K)])
    w3_big = np.stack([block_diag(w3_pi[kt]) for kt in range(K)])
    b2_big = np.tile(np.asarray(tp["b2"], np.float32), nb * F1)[None, :]
    b3_big = np.tile(np.asarray(tp["b3"], np.float32), nb * F1)[None, :]

    # Linear: fold torch's transpose(1,2)+flatten (c-major) into a row permutation, then block-diag.
    lwt = np.asarray(tp["lin_w_t"], np.float32)                                   # (L, C3*F1)
    lw_perm = np.transpose(lwt.reshape(L, C3, F1), (2, 1, 0)).reshape(F1 * C3, L)
    lw_big = block_diag(lw_perm)                                                  # (nb*F1*C3, nb*L)
    lin_b_big = np.tile(np.asarray(tp["lin_b"], np.float32), nb)[None, :]
    g_big = np.tile(np.asarray(tp["ln_g"], np.float32), nb)[None, :]
    beta_big = np.tile(np.asarray(tp["ln_b"], np.float32), nb)[None, :]

    # Block-diagonal averaging matrix for per-item LayerNorm mean/var (kept f32 for accuracy).
    mavg = block_diag(np.full((L, L), 1.0 / L, np.float32))

    bf16 = jnp.bfloat16
    return dict(
        nb=nb,
        w1_big=jnp.asarray(w1_big, bf16), b1_big=jnp.asarray(b1_big),
        w2_big=jnp.asarray(w2_big, bf16), b2_big=jnp.asarray(b2_big),
        w3_big=jnp.asarray(w3_big, bf16), b3_big=jnp.asarray(b3_big),
        lin_w=jnp.asarray(lw_big, bf16), lin_b=jnp.asarray(lin_b_big),
        mavg=jnp.asarray(mavg),
        ln_g=jnp.asarray(g_big), ln_b=jnp.asarray(beta_big),
    )


# --------------------------------------------------------------------------------------
# Mask subsampling (tiny bookkeeping -> plain JAX glue)
# --------------------------------------------------------------------------------------
def subsample_mask_jax(sequence_mask, factor):
    if factor == 1:
        return sequence_mask
    B, T = sequence_mask.shape
    padding = (-T) % factor
    m = jnp.pad(sequence_mask, ((0, 0), (0, padding)), constant_values=0)
    m = m.reshape(B, -1, factor)
    sub = jnp.all(m == 1, axis=2)
    return sub.astype(sequence_mask.dtype)


# --------------------------------------------------------------------------------------
# Full VGGFrontendV1 forward (eval mode): one pallas_call over ceil(B/NB) lane-packed steps
# --------------------------------------------------------------------------------------
def vgg_frontend_forward(x, sequence_mask, kparams, cfg):
    nb = kparams["nb"]
    B, T, F = x.shape
    K = cfg["conv_kernel_size"]
    pad = K // 2
    P = cfg["pool_size"]
    F1 = F // P
    C1, C2, C3 = cfg["conv1_channels"], cfg["conv2_channels"], cfg["conv3_channels"]
    s1, s2, s3 = cfg["conv1_stride"], cfg["conv2_stride"], cfg["conv3_stride"]
    L = cfg["linear_size"]
    T1 = _conv_out_len(T, s1)
    T2 = _conv_out_len(T1, s2)
    T3 = _conv_out_len(T2, s3)
    WB = nb * F1 * C1

    # Pack NB batch items side-by-side along the lane axis (layout plumbing in the wrapper).
    Bp = ((B + nb - 1) // nb) * nb
    nsteps = Bp // nb
    xb = x.astype(jnp.float32)
    if Bp != B:
        xb = jnp.concatenate([xb, jnp.zeros((Bp - B, T, F), jnp.float32)], axis=0)
    x_packed = xb.reshape(nsteps, nb, T, F).transpose(0, 2, 1, 3).reshape(nsteps, T, nb * F)

    # VMEM budget (scratch + double-buffered blocks + weights), capped at v7x's 64 MiB physical VMEM.
    def _nbytes(a):
        return int(a.size) * a.dtype.itemsize
    w_bytes = sum(_nbytes(kparams[k]) for k in
                  ("w1_big", "b1_big", "w2_big", "b2_big", "w3_big", "b3_big",
                   "lin_w", "lin_b", "mavg", "ln_g", "ln_b"))
    scr_bytes = 4 * ((T + 2 * pad) * nb * F + (T1 + 2 * pad) * WB + (T2 + 2 * pad) * nb * F1 * C2)
    io_bytes = 4 * (T * nb * F + T3 * nb * L)
    est = 2 * (w_bytes + io_bytes) + scr_bytes
    vmem_limit = int(min(max(4 * est, 32 * 1024 * 1024), 64 * 1024 * 1024))

    kernel = functools.partial(
        _vgg_fused_kernel, K=K, pad=pad, P=P,
        T=T, T1=T1, T2=T2, T3=T3, s1=s1, s2=s2, s3=s3, WB=WB, eps=1e-5)

    out_packed = pl.pallas_call(
        kernel,
        out_shape=jax.ShapeDtypeStruct((nsteps, T3, nb * L), jnp.float32),
        grid=(nsteps,),
        in_specs=[
            pl.BlockSpec((1, T, nb * F), lambda b: (b, 0, 0)),
            pl.BlockSpec((K, nb * F, P * WB), lambda b: (0, 0, 0)),
            pl.BlockSpec((1, P * WB), lambda b: (0, 0)),
            pl.BlockSpec((K, nb * F1 * C1, nb * F1 * C2), lambda b: (0, 0, 0)),
            pl.BlockSpec((1, nb * F1 * C2), lambda b: (0, 0)),
            pl.BlockSpec((K, nb * F1 * C2, nb * F1 * C3), lambda b: (0, 0, 0)),
            pl.BlockSpec((1, nb * F1 * C3), lambda b: (0, 0)),
            pl.BlockSpec((nb * F1 * C3, nb * L), lambda b: (0, 0)),
            pl.BlockSpec((1, nb * L), lambda b: (0, 0)),
            pl.BlockSpec((nb * L, nb * L), lambda b: (0, 0)),
            pl.BlockSpec((1, nb * L), lambda b: (0, 0)),
            pl.BlockSpec((1, nb * L), lambda b: (0, 0)),
        ],
        out_specs=pl.BlockSpec((1, T3, nb * L), lambda b: (b, 0, 0)),
        scratch_shapes=[
            pltpu.VMEM((T + 2 * pad, nb * F), jnp.float32),        # time-padded packed input
            pltpu.VMEM((T1 + 2 * pad, WB), jnp.float32),           # time-padded pooled conv1 output
            pltpu.VMEM((T2 + 2 * pad, nb * F1 * C2), jnp.float32), # time-padded conv2 output
        ],
        compiler_params=pltpu.CompilerParams(
            dimension_semantics=("parallel",),       # shards steps across v7x's 2 TCs; no-op elsewhere
            vmem_limit_bytes=vmem_limit),
    )(x_packed, kparams["w1_big"], kparams["b1_big"], kparams["w2_big"], kparams["b2_big"],
      kparams["w3_big"], kparams["b3_big"], kparams["lin_w"], kparams["lin_b"],
      kparams["mavg"], kparams["ln_g"], kparams["ln_b"])

    # Unpack the lane-packed output back to (B, T3, L) (wrapper-side layout plumbing).
    out = out_packed.reshape(nsteps, T3, nb, L).transpose(0, 2, 1, 3).reshape(Bp, T3, L)[:B]

    factor = s1 * s2 * s3
    sub = None if sequence_mask is None else subsample_mask_jax(sequence_mask, factor)
    return out, sub


# --------------------------------------------------------------------------------------
# Pure-JAX reference (mirrors the PyTorch module exactly, torch weight layouts)
# --------------------------------------------------------------------------------------
def reference_forward(x, sequence_mask, tp, cfg):
    pad = cfg["conv_kernel_size"] // 2
    dn = ("NCHW", "OIHW", "NCHW")
    hi = lax.Precision.HIGHEST
    xi = x[:, None, :, :]
    y = lax.conv_general_dilated(xi, tp["w1_t"], (cfg["conv1_stride"], 1),
                                 ((pad, pad), (0, 0)), dimension_numbers=dn,
                                 precision=hi) + tp["b1"][None, :, None, None]
    y = y * jax.nn.sigmoid(y)
    P = cfg["pool_size"]
    y = lax.reduce_window(y, -jnp.inf, lax.max, (1, 1, 1, P), (1, 1, 1, P), "VALID")
    y = lax.conv_general_dilated(y, tp["w2_t"], (cfg["conv2_stride"], 1),
                                 ((pad, pad), (pad, pad)), dimension_numbers=dn,
                                 precision=hi) + tp["b2"][None, :, None, None]
    y = y * jax.nn.sigmoid(y)
    y = lax.conv_general_dilated(y, tp["w3_t"], (cfg["conv3_stride"], 1),
                                 ((pad, pad), (pad, pad)), dimension_numbers=dn,
                                 precision=hi) + tp["b3"][None, :, None, None]
    y = y * jax.nn.sigmoid(y)
    B, C3, T3, F3 = y.shape
    y = jnp.transpose(y, (0, 2, 1, 3)).reshape(B, T3, C3 * F3)
    y = jnp.einsum("btd,ld->btl", y, tp["lin_w_t"], precision=hi) + tp["lin_b"]
    mean = jnp.mean(y, axis=-1, keepdims=True)
    var = jnp.mean(jnp.square(y - mean), axis=-1, keepdims=True)
    y = (y - mean) / jnp.sqrt(var + 1e-5) * tp["ln_g"] + tp["ln_b"]
    factor = cfg["conv1_stride"] * cfg["conv2_stride"] * cfg["conv3_stride"]
    sub = None if sequence_mask is None else subsample_mask_jax(sequence_mask, factor)
    return y, sub


if __name__ == "__main__":
    # VGGFrontendConfigV1 (small shapes)
    cfg = dict(num_inputs=16, conv1_channels=4, conv2_channels=8, conv3_channels=8,
               conv_kernel_size=3, conv1_stride=1, conv2_stride=2, conv3_stride=1,
               pool_size=2, linear_size=32, dropout=0.0)
    B, T = 5, 8                       # B=5 exercises batch padding + a 2-step grid with NB=4
    C1, C2, C3 = cfg["conv1_channels"], cfg["conv2_channels"], cfg["conv3_channels"]
    K, L = cfg["conv_kernel_size"], cfg["linear_size"]
    Din = C3 * (cfg["num_inputs"] // cfg["pool_size"])

    key = jax.random.PRNGKey(0)
    ks = jax.random.split(key, 12)
    # deterministic "torch-layout" parameters (scales chosen so activations stay O(1))
    tp = dict(
        w1_t=0.3 * jax.random.normal(ks[0], (C1, 1, K, 1), jnp.float32),
        b1=0.1 * jax.random.normal(ks[1], (C1,), jnp.float32),
        w2_t=0.25 * jax.random.normal(ks[2], (C2, C1, K, K), jnp.float32),
        b2=0.1 * jax.random.normal(ks[3], (C2,), jnp.float32),
        w3_t=0.2 * jax.random.normal(ks[4], (C3, C2, K, K), jnp.float32),
        b3=0.1 * jax.random.normal(ks[5], (C3,), jnp.float32),
        lin_w_t=0.15 * jax.random.normal(ks[6], (L, Din), jnp.float32),
        lin_b=0.1 * jax.random.normal(ks[7], (L,), jnp.float32),
        ln_g=1.0 + 0.1 * jax.random.normal(ks[8], (L,), jnp.float32),
        ln_b=0.1 * jax.random.normal(ks[9], (L,), jnp.float32),
    )
    kparams = prepare_params(tp, cfg, nb=4)

    x = jax.random.normal(ks[10], (B, T, cfg["num_inputs"]), jnp.float32)
    lengths = jnp.array([8, 5, 3, 7, 2])
    sequence_mask = (jnp.arange(T)[None, :] < lengths[:, None]).astype(jnp.float32)

    out, sub = vgg_frontend_forward(x, sequence_mask, kparams, cfg)
    out = jax.block_until_ready(out)
    sub = jax.block_until_ready(sub)

    ref_out, ref_sub = reference_forward(x, sequence_mask, tp, cfg)
    # bf16 MXU operands (vs HIGHEST-precision f32 reference) -> slightly looser tolerance.
    np.testing.assert_allclose(np.asarray(out), np.asarray(ref_out), rtol=4e-2, atol=4e-2)
    np.testing.assert_allclose(np.asarray(sub), np.asarray(ref_sub))
    assert out.shape == (B, 4, L) and sub.shape == (B, 4)

    print("KERNEL_OK")
</pallas_src>

<mosaic_0001>
module attributes {stable_mosaic.version = 11 : i64} {
  func.func @_vgg_fused_kernel(%arg0: i32, %arg1: memref<1x8x64xf32, #tpu.memory_space<vmem>>, %arg2: memref<3x64x256xbf16, #tpu.memory_space<vmem>>, %arg3: memref<1x256xf32, #tpu.memory_space<vmem>>, %arg4: memref<3x128x256xbf16, #tpu.memory_space<vmem>>, %arg5: memref<1x256xf32, #tpu.memory_space<vmem>>, %arg6: memref<3x256x256xbf16, #tpu.memory_space<vmem>>, %arg7: memref<1x256xf32, #tpu.memory_space<vmem>>, %arg8: memref<256x128xbf16, #tpu.memory_space<vmem>>, %arg9: memref<1x128xf32, #tpu.memory_space<vmem>>, %arg10: memref<128x128xf32, #tpu.memory_space<vmem>>, %arg11: memref<1x128xf32, #tpu.memory_space<vmem>>, %arg12: memref<1x128xf32, #tpu.memory_space<vmem>>, %arg13: memref<1x4x128xf32, #tpu.memory_space<vmem>>, %arg14: memref<10x64xf32, #tpu.memory_space<vmem>>, %arg15: memref<10x128xf32, #tpu.memory_space<vmem>>, %arg16: memref<6x256xf32, #tpu.memory_space<vmem>>) attributes {dimension_semantics = [#tpu.dimension_semantics<parallel>], iteration_bounds = array<i64: 2>, scalar_prefetch = 0 : i64, scratch_operands = 3 : i64, tpu.core_type = #tpu.core_type<tc>, window_params = [{transform_indices = @transform_0, window_bounds = array<i64: 1, 8, 64>}, {pipeline_mode = #tpu.pipeline_mode<synchronous>, transform_indices = @transform_1, window_bounds = array<i64: 3, 64, 256>}, {pipeline_mode = #tpu.pipeline_mode<synchronous>, transform_indices = @transform_2, window_bounds = array<i64: 1, 256>}, {pipeline_mode = #tpu.pipeline_mode<synchronous>, transform_indices = @transform_3, window_bounds = array<i64: 3, 128, 256>}, {pipeline_mode = #tpu.pipeline_mode<synchronous>, transform_indices = @transform_4, window_bounds = array<i64: 1, 256>}, {pipeline_mode = #tpu.pipeline_mode<synchronous>, transform_indices = @transform_5, window_bounds = array<i64: 3, 256, 256>}, {pipeline_mode = #tpu.pipeline_mode<synchronous>, transform_indices = @transform_6, window_bounds = array<i64: 1, 256>}, {pipeline_mode = #tpu.pipeline_mode<synchronous>, transform_indices = @transform_7, window_bounds = array<i64: 256, 128>}, {pipeline_mode = #tpu.pipeline_mode<synchronous>, transform_indices = @transform_8, window_bounds = array<i64: 1, 128>}, {pipeline_mode = #tpu.pipeline_mode<synchronous>, transform_indices = @transform_9, window_bounds = array<i64: 128, 128>}, {pipeline_mode = #tpu.pipeline_mode<synchronous>, transform_indices = @transform_10, window_bounds = array<i64: 1, 128>}, {pipeline_mode = #tpu.pipeline_mode<synchronous>, transform_indices = @transform_11, window_bounds = array<i64: 1, 128>}, {transform_indices = @transform_12, window_bounds = array<i64: 1, 4, 128>}]} {
    %cst = arith.constant 0.000000e+00 : f32
    %0 = vector.broadcast %cst : f32 to vector<1x64xf32>
    %c0 = arith.constant 0 : index
    %c0_0 = arith.constant 0 : index
    %1 = vector.load %arg14[%c0, %c0_0] : memref<10x64xf32, #tpu.memory_space<vmem>>, vector<1x64xf32>
    tpu.vector_store %arg14[%c0, %c0_0], %0 {strides = array<i32>} : memref<10x64xf32, #tpu.memory_space<vmem>>, vector<1x64xf32>,
    %c9 = arith.constant 9 : index
    %c0_1 = arith.constant 0 : index
    %2 = vector.load %arg14[%c9, %c0_1] : memref<10x64xf32, #tpu.memory_space<vmem>>, vector<1x64xf32>
    tpu.vector_store %arg14[%c9, %c0_1], %0 {strides = array<i32>} : memref<10x64xf32, #tpu.memory_space<vmem>>, vector<1x64xf32>,
    %cst_2 = arith.constant 0.000000e+00 : f32
    %3 = vector.broadcast %cst_2 : f32 to vector<1x128xf32>
    %c0_3 = arith.constant 0 : index
    %c0_4 = arith.constant 0 : index
    %4 = vector.load %arg15[%c0_3, %c0_4] : memref<10x128xf32, #tpu.memory_space<vmem>>, vector<1x128xf32>
    tpu.vector_store %arg15[%c0_3, %c0_4], %3 {strides = array<i32>} : memref<10x128xf32, #tpu.memory_space<vmem>>, vector<1x128xf32>,
    %c9_5 = arith.constant 9 : index
    %c0_6 = arith.constant 0 : index
    %5 = vector.load %arg15[%c9_5, %c0_6] : memref<10x128xf32, #tpu.memory_space<vmem>>, vector<1x128xf32>
    tpu.vector_store %arg15[%c9_5, %c0_6], %3 {strides = array<i32>} : memref<10x128xf32, #tpu.memory_space<vmem>>, vector<1x128xf32>,
    %cst_7 = arith.constant 0.000000e+00 : f32
    %6 = vector.broadcast %cst_7 : f32 to vector<1x256xf32>
    %c0_8 = arith.constant 0 : index
    %c0_9 = arith.constant 0 : index
    %7 = vector.load %arg16[%c0_8, %c0_9] : memref<6x256xf32, #tpu.memory_space<vmem>>, vector<1x256xf32>
    tpu.vector_store %arg16[%c0_8, %c0_9], %6 {strides = array<i32>} : memref<6x256xf32, #tpu.memory_space<vmem>>, vector<1x256xf32>,
    %c5 = arith.constant 5 : index
    %c0_10 = arith.constant 0 : index
    %8 = vector.load %arg16[%c5, %c0_10] : memref<6x256xf32, #tpu.memory_space<vmem>>, vector<1x256xf32>
    tpu.vector_store %arg16[%c5, %c0_10], %6 {strides = array<i32>} : memref<6x256xf32, #tpu.memory_space<vmem>>, vector<1x256xf32>,
    %c0_11 = arith.constant 0 : index
    %c0_12 = arith.constant 0 : index
    %c0_13 = arith.constant 0 : index
    %9 = vector.load %arg1[%c0_11, %c0_12, %c0_13] : memref<1x8x64xf32, #tpu.memory_space<vmem>>, vector<1x8x64xf32>
    %10 = vector.shape_cast %9 : vector<1x8x64xf32> to vector<8x64xf32>
    %c1 = arith.constant 1 : index
    %c0_14 = arith.constant 0 : index
    %11 = vector.load %arg14[%c1, %c0_14] : memref<10x64xf32, #tpu.memory_space<vmem>>, vector<8x64xf32>
    tpu.vector_store %arg14[%c1, %c0_14], %10 {strides = array<i32>} : memref<10x64xf32, #tpu.memory_space<vmem>>, vector<8x64xf32>,
    %cst_15 = arith.constant 0.000000e+00 : f32
    %12 = vector.broadcast %cst_15 : f32 to vector<8x256xf32>
    %c0_16 = arith.constant 0 : index
    %c0_17 = arith.constant 0 : index
    %13 = vector.load %arg14[%c0_16, %c0_17] : memref<10x64xf32, #tpu.memory_space<vmem>>, vector<8x64xf32>
    %14 = arith.truncf %13 : vector<8x64xf32> to vector<8x64xbf16>
    %c0_18 = arith.constant 0 : index
    %c0_19 = arith.constant 0 : index
    %c0_20 = arith.constant 0 : index
    %15 = vector.load %arg2[%c0_18, %c0_19, %c0_20] : memref<3x64x256xbf16, #tpu.memory_space<vmem>>, vector<1x64x256xbf16>
    %16 = vector.shape_cast %15 : vector<1x64x256xbf16> to vector<64x256xbf16>
    %cst_21 = arith.constant dense<0.000000e+00> : vector<8x256xf32>
    %17 = tpu.matmul %14, %16, %cst_21 {dimension_numbers = #tpu.dot_dimension_numbers<[1], [0], [0], [1], [0, 0, 1, 1], [], []>} : vector<8x64xbf16>, vector<64x256xbf16>, vector<8x256xf32> -> vector<8x256xf32>
    %18 = arith.addf %12, %17 : vector<8x256xf32>
    %c1_22 = arith.constant 1 : index
    %c0_23 = arith.constant 0 : index
    %19 = vector.load %arg14[%c1_22, %c0_23] : memref<10x64xf32, #tpu.memory_space<vmem>>, vector<8x64xf32>
    %20 = arith.truncf %19 : vector<8x64xf32> to vector<8x64xbf16>
    %c1_24 = arith.constant 1 : index
    %c0_25 = arith.constant 0 : index
    %c0_26 = arith.constant 0 : index
    %21 = vector.load %arg2[%c1_24, %c0_25, %c0_26] : memref<3x64x256xbf16, #tpu.memory_space<vmem>>, vector<1x64x256xbf16>
    %22 = vector.shape_cast %21 : vector<1x64x256xbf16> to vector<64x256xbf16>
    %cst_27 = arith.constant dense<0.000000e+00> : vector<8x256xf32>
    %23 = tpu.matmul %20, %22, %cst_27 {dimension_numbers = #tpu.dot_dimension_numbers<[1], [0], [0], [1], [0, 0, 1, 1], [], []>} : vector<8x64xbf16>, vector<64x256xbf16>, vector<8x256xf32> -> vector<8x256xf32>
    %24 = arith.addf %18, %23 : vector<8x256xf32>
    %c2 = arith.constant 2 : index
    %c0_28 = arith.constant 0 : index
    %25 = vector.load %arg14[%c2, %c0_28] : memref<10x64xf32, #tpu.memory_space<vmem>>, vector<8x64xf32>
    %26 = arith.truncf %25 : vector<8x64xf32> to vector<8x64xbf16>
    %c2_29 = arith.constant 2 : index
    %c0_30 = arith.constant 0 : index
    %c0_31 = arith.constant 0 : index
    %27 = vector.load %arg2[%c2_29, %c0_30, %c0_31] : memref<3x64x256xbf16, #tpu.memory_space<vmem>>, vector<1x64x256xbf16>
    %28 = vector.shape_cast %27 : vector<1x64x256xbf16> to vector<64x256xbf16>
    %cst_32 = arith.constant dense<0.000000e+00> : vector<8x256xf32>
    %29 = tpu.matmul %26, %28, %cst_32 {dimension_numbers = #tpu.dot_dimension_numbers<[1], [0], [0], [1], [0, 0, 1, 1], [], []>} : vector<8x64xbf16>, vector<64x256xbf16>, vector<8x256xf32> -> vector<8x256xf32>
    %30 = arith.addf %24, %29 : vector<8x256xf32>
    %c0_33 = arith.constant 0 : index
    %c0_34 = arith.constant 0 : index
    %31 = vector.load %arg3[%c0_33, %c0_34] : memref<1x256xf32, #tpu.memory_space<vmem>>, vector<1x256xf32>
    %32 = vector.broadcast %31 : vector<1x256xf32> to vector<8x256xf32>
    %33 = arith.addf %30, %32 : vector<8x256xf32>
    %34 = arith.negf %33 : vector<8x256xf32>
    %35 = math.exp %34 : vector<8x256xf32>
    %cst_35 = arith.constant 1.000000e+00 : f32
    %36 = vector.broadcast %cst_35 : f32 to vector<8x256xf32>
    %37 = arith.addf %36, %35 : vector<8x256xf32>
    %38 = arith.divf %36, %37 : vector<8x256xf32>
    %39 = arith.mulf %33, %38 : vector<8x256xf32>
    %40 = vector.extract_strided_slice %39 {offsets = [0, 0], sizes = [8, 128], strides = [1, 1]} : vector<8x256xf32> to vector<8x128xf32>
    %41 = vector.extract_strided_slice %39 {offsets = [0, 128], sizes = [8, 128], strides = [1, 1]} : vector<8x256xf32> to vector<8x128xf32>
    %42 = arith.maximumf %40, %41 : vector<8x128xf32>
    %c1_36 = arith.constant 1 : index
    %c0_37 = arith.constant 0 : index
    %43 = vector.load %arg15[%c1_36, %c0_37] : memref<10x128xf32, #tpu.memory_space<vmem>>, vector<8x128xf32>
    tpu.vector_store %arg15[%c1_36, %c0_37], %42 {strides = array<i32>} : memref<10x128xf32, #tpu.memory_space<vmem>>, vector<8x128xf32>,
    %cst_38 = arith.constant 0.000000e+00 : f32
    %44 = vector.broadcast %cst_38 : f32 to vector<4x256xf32>
    %c0_39 = arith.constant 0 : index
    %c0_40 = arith.constant 0 : index
    %45 = tpu.strided_load %arg15[%c0_39, %c0_40] {strides = array<i32: 2, 1>} : memref<10x128xf32, #tpu.memory_space<vmem>>, vector<4x128xf32>
    %46 = arith.truncf %45 : vector<4x128xf32> to vector<4x128xbf16>
    %c0_41 = arith.constant 0 : index
    %c0_42 = arith.constant 0 : index
    %c0_43 = arith.constant 0 : index
    %47 = vector.load %arg4[%c0_41, %c0_42, %c0_43] : memref<3x128x256xbf16, #tpu.memory_space<vmem>>, vector<1x128x256xbf16>
    %48 = vector.shape_cast %47 : vector<1x128x256xbf16> to vector<128x256xbf16>
    %cst_44 = arith.constant dense<0.000000e+00> : vector<4x256xf32>
    %49 = tpu.matmul %46, %48, %cst_44 {dimension_numbers = #tpu.dot_dimension_numbers<[1], [0], [0], [1], [0, 0, 1, 1], [], []>} : vector<4x128xbf16>, vector<128x256xbf16>, vector<4x256xf32> -> vector<4x256xf32>
    %50 = arith.addf %44, %49 : vector<4x256xf32>
    %c1_45 = arith.constant 1 : index
    %c0_46 = arith.constant 0 : index
    %51 = tpu.strided_load %arg15[%c1_45, %c0_46] {strides = array<i32: 2, 1>} : memref<10x128xf32, #tpu.memory_space<vmem>>, vector<4x128xf32>
    %52 = arith.truncf %51 : vector<4x128xf32> to vector<4x128xbf16>
    %c1_47 = arith.constant 1 : index
    %c0_48 = arith.constant 0 : index
    %c0_49 = arith.constant 0 : index
    %53 = vector.load %arg4[%c1_47, %c0_48, %c0_49] : memref<3x128x256xbf16, #tpu.memory_space<vmem>>, vector<1x128x256xbf16>
    %54 = vector.shape_cast %53 : vector<1x128x256xbf16> to vector<128x256xbf16>
    %cst_50 = arith.constant dense<0.000000e+00> : vector<4x256xf32>
    %55 = tpu.matmul %52, %54, %cst_50 {dimension_numbers = #tpu.dot_dimension_numbers<[1], [0], [0], [1], [0, 0, 1, 1], [], []>} : vector<4x128xbf16>, vector<128x256xbf16>, vector<4x256xf32> -> vector<4x256xf32>
    %56 = arith.addf %50, %55 : vector<4x256xf32>
    %c2_51 = arith.constant 2 : index
    %c0_52 = arith.constant 0 : index
    %57 = tpu.strided_load %arg15[%c2_51, %c0_52] {strides = array<i32: 2, 1>} : memref<10x128xf32, #tpu.memory_space<vmem>>, vector<4x128xf32>
    %58 = arith.truncf %57 : vector<4x128xf32> to vector<4x128xbf16>
    %c2_53 = arith.constant 2 : index
    %c0_54 = arith.constant 0 : index
    %c0_55 = arith.constant 0 : index
    %59 = vector.load %arg4[%c2_53, %c0_54, %c0_55] : memref<3x128x256xbf16, #tpu.memory_space<vmem>>, vector<1x128x256xbf16>
    %60 = vector.shape_cast %59 : vector<1x128x256xbf16> to vector<128x256xbf16>
    %cst_56 = arith.constant dense<0.000000e+00> : vector<4x256xf32>
    %61 = tpu.matmul %58, %60, %cst_56 {dimension_numbers = #tpu.dot_dimension_numbers<[1], [0], [0], [1], [0, 0, 1, 1], [], []>} : vector<4x128xbf16>, vector<128x256xbf16>, vector<4x256xf32> -> vector<4x256xf32>
    %62 = arith.addf %56, %61 : vector<4x256xf32>
    %c0_57 = arith.constant 0 : index
    %c0_58 = arith.constant 0 : index
    %63 = vector.load %arg5[%c0_57, %c0_58] : memref<1x256xf32, #tpu.memory_space<vmem>>, vector<1x256xf32>
    %64 = vector.broadcast %63 : vector<1x256xf32> to vector<4x256xf32>
    %65 = arith.addf %62, %64 : vector<4x256xf32>
    %66 = arith.negf %65 : vector<4x256xf32>
    %67 = math.exp %66 : vector<4x256xf32>
    %cst_59 = arith.constant 1.000000e+00 : f32
    %68 = vector.broadcast %cst_59 : f32 to vector<4x256xf32>
    %69 = arith.addf %68, %67 : vector<4x256xf32>
    %70 = arith.divf %68, %69 : vector<4x256xf32>
    %71 = arith.mulf %65, %70 : vector<4x256xf32>
    %c1_60 = arith.constant 1 : index
    %c0_61 = arith.constant 0 : index
    %72 = vector.load %arg16[%c1_60, %c0_61] : memref<6x256xf32, #tpu.memory_space<vmem>>, vector<4x256xf32>
    tpu.vector_store %arg16[%c1_60, %c0_61], %71 {strides = array<i32>} : memref<6x256xf32, #tpu.memory_space<vmem>>, vector<4x256xf32>,
    %cst_62 = arith.constant 0.000000e+00 : f32
    %73 = vector.broadcast %cst_62 : f32 to vector<4x256xf32>
    %c0_63 = arith.constant 0 : index
    %c0_64 = arith.constant 0 : index
    %74 = vector.load %arg16[%c0_63, %c0_64] : memref<6x256xf32, #tpu.memory_space<vmem>>, vector<4x256xf32>
    %75 = arith.truncf %74 : vector<4x256xf32> to vector<4x256xbf16>
    %c0_65 = arith.constant 0 : index
    %c0_66 = arith.constant 0 : index
    %c0_67 = arith.constant 0 : index
    %76 = vector.load %arg6[%c0_65, %c0_66, %c0_67] : memref<3x256x256xbf16, #tpu.memory_space<vmem>>, vector<1x256x256xbf16>
    %77 = vector.shape_cast %76 : vector<1x256x256xbf16> to vector<256x256xbf16>
    %cst_68 = arith.constant dense<0.000000e+00> : vector<4x256xf32>
    %78 = tpu.matmul %75, %77, %cst_68 {dimension_numbers = #tpu.dot_dimension_numbers<[1], [0], [0], [1], [0, 0, 1, 1], [], []>} : vector<4x256xbf16>, vector<256x256xbf16>, vector<4x256xf32> -> vector<4x256xf32>
    %79 = arith.addf %73, %78 : vector<4x256xf32>
    %c1_69 = arith.constant 1 : index
    %c0_70 = arith.constant 0 : index
    %80 = vector.load %arg16[%c1_69, %c0_70] : memref<6x256xf32, #tpu.memory_space<vmem>>, vector<4x256xf32>
    %81 = arith.truncf %80 : vector<4x256xf32> to vector<4x256xbf16>
    %c1_71 = arith.constant 1 : index
    %c0_72 = arith.constant 0 : index
    %c0_73 = arith.constant 0 : index
    %82 = vector.load %arg6[%c1_71, %c0_72, %c0_73] : memref<3x256x256xbf16, #tpu.memory_space<vmem>>, vector<1x256x256xbf16>
    %83 = vector.shape_cast %82 : vector<1x256x256xbf16> to vector<256x256xbf16>
    %cst_74 = arith.constant dense<0.000000e+00> : vector<4x256xf32>
    %84 = tpu.matmul %81, %83, %cst_74 {dimension_numbers = #tpu.dot_dimension_numbers<[1], [0], [0], [1], [0, 0, 1, 1], [], []>} : vector<4x256xbf16>, vector<256x256xbf16>, vector<4x256xf32> -> vector<4x256xf32>
    %85 = arith.addf %79, %84 : vector<4x256xf32>
    %c2_75 = arith.constant 2 : index
    %c0_76 = arith.constant 0 : index
    %86 = vector.load %arg16[%c2_75, %c0_76] : memref<6x256xf32, #tpu.memory_space<vmem>>, vector<4x256xf32>
    %87 = arith.truncf %86 : vector<4x256xf32> to vector<4x256xbf16>
    %c2_77 = arith.constant 2 : index
    %c0_78 = arith.constant 0 : index
    %c0_79 = arith.constant 0 : index
    %88 = vector.load %arg6[%c2_77, %c0_78, %c0_79] : memref<3x256x256xbf16, #tpu.memory_space<vmem>>, vector<1x256x256xbf16>
    %89 = vector.shape_cast %88 : vector<1x256x256xbf16> to vector<256x256xbf16>
    %cst_80 = arith.constant dense<0.000000e+00> : vector<4x256xf32>
    %90 = tpu.matmul %87, %89, %cst_80 {dimension_numbers = #tpu.dot_dimension_numbers<[1], [0], [0], [1], [0, 0, 1, 1], [], []>} : vector<4x256xbf16>, vector<256x256xbf16>, vector<4x256xf32> -> vector<4x256xf32>
    %91 = arith.addf %85, %90 : vector<4x256xf32>
    %c0_81 = arith.constant 0 : index
    %c0_82 = arith.constant 0 : index
    %92 = vector.load %arg7[%c0_81, %c0_82] : memref<1x256xf32, #tpu.memory_space<vmem>>, vector<1x256xf32>
    %93 = vector.broadcast %92 : vector<1x256xf32> to vector<4x256xf32>
    %94 = arith.addf %91, %93 : vector<4x256xf32>
    %95 = arith.negf %94 : vector<4x256xf32>
    %96 = math.exp %95 : vector<4x256xf32>
    %cst_83 = arith.constant 1.000000e+00 : f32
    %97 = vector.broadcast %cst_83 : f32 to vector<4x256xf32>
    %98 = arith.addf %97, %96 : vector<4x256xf32>
    %99 = arith.divf %97, %98 : vector<4x256xf32>
    %100 = arith.mulf %94, %99 : vector<4x256xf32>
    %101 = arith.truncf %100 : vector<4x256xf32> to vector<4x256xbf16>
    %c0_84 = arith.constant 0 : index
    %c0_85 = arith.constant 0 : index
    %102 = vector.load %arg8[%c0_84, %c0_85] : memref<256x128xbf16, #tpu.memory_space<vmem>>, vector<256x128xbf16>
    %cst_86 = arith.constant dense<0.000000e+00> : vector<4x128xf32>
    %103 = tpu.matmul %101, %102, %cst_86 {dimension_numbers = #tpu.dot_dimension_numbers<[1], [0], [0], [1], [0, 0, 1, 1], [], []>} : vector<4x256xbf16>, vector<256x128xbf16>, vector<4x128xf32> -> vector<4x128xf32>
    %c0_87 = arith.constant 0 : index
    %c0_88 = arith.constant 0 : index
    %104 = vector.load %arg9[%c0_87, %c0_88] : memref<1x128xf32, #tpu.memory_space<vmem>>, vector<1x128xf32>
    %105 = vector.broadcast %104 : vector<1x128xf32> to vector<4x128xf32>
    %106 = arith.addf %103, %105 : vector<4x128xf32>
    %c0_89 = arith.constant 0 : index
    %c0_90 = arith.constant 0 : index
    %107 = vector.load %arg10[%c0_89, %c0_90] : memref<128x128xf32, #tpu.memory_space<vmem>>, vector<128x128xf32>
    %cst_91 = arith.constant dense<0.000000e+00> : vector<4x128xf32>
    %108 = tpu.matmul %106, %107, %cst_91 {dimension_numbers = #tpu.dot_dimension_numbers<[1], [0], [0], [1], [0, 0, 1, 1], [], []>} : vector<4x128xf32>, vector<128x128xf32>, vector<4x128xf32> -> vector<4x128xf32>
    %109 = arith.subf %106, %108 : vector<4x128xf32>
    %110 = arith.mulf %109, %109 : vector<4x128xf32>
    %c0_92 = arith.constant 0 : index
    %c0_93 = arith.constant 0 : index
    %111 = vector.load %arg10[%c0_92, %c0_93] : memref<128x128xf32, #tpu.memory_space<vmem>>, vector<128x128xf32>
    %cst_94 = arith.constant dense<0.000000e+00> : vector<4x128xf32>
    %112 = tpu.matmul %110, %111, %cst_94 {dimension_numbers = #tpu.dot_dimension_numbers<[1], [0], [0], [1], [0, 0, 1, 1], [], []>} : vector<4x128xf32>, vector<128x128xf32>, vector<4x128xf32> -> vector<4x128xf32>
    %cst_95 = arith.constant 9.99999974E-6 : f32
    %113 = vector.broadcast %cst_95 : f32 to vector<4x128xf32>
    %114 = arith.addf %112, %113 : vector<4x128xf32>
    %115 = math.rsqrt %114 : vector<4x128xf32>
    %116 = arith.mulf %109, %115 : vector<4x128xf32>
    %c0_96 = arith.constant 0 : index
    %c0_97 = arith.constant 0 : index
    %117 = vector.load %arg11[%c0_96, %c0_97] : memref<1x128xf32, #tpu.memory_space<vmem>>, vector<1x128xf32>
    %118 = vector.broadcast %117 : vector<1x128xf32> to vector<4x128xf32>
    %119 = arith.mulf %116, %118 : vector<4x128xf32>
    %c0_98 = arith.constant 0 : index
    %c0_99 = arith.constant 0 : index
    %120 = vector.load %arg12[%c0_98, %c0_99] : memref<1x128xf32, #tpu.memory_space<vmem>>, vector<1x128xf32>
    %121 = vector.broadcast %120 : vector<1x128xf32> to vector<4x128xf32>
    %122 = arith.addf %119, %121 : vector<4x128xf32>
    %c0_100 = arith.constant 0 : index
    %c0_101 = arith.constant 0 : index
    %c0_102 = arith.constant 0 : index
    %123 = vector.load %arg13[%c0_100, %c0_101, %c0_102] : memref<1x4x128xf32, #tpu.memory_space<vmem>>, vector<1x4x128xf32>
    %124 = vector.shape_cast %123 : vector<1x4x128xf32> to vector<4x128xf32>
    %125 = vector.shape_cast %122 : vector<4x128xf32> to vector<1x4x128xf32>
    tpu.vector_store %arg13[%c0_100, %c0_101, %c0_102], %125 {strides = array<i32>} : memref<1x4x128xf32, #tpu.memory_space<vmem>>, vector<1x4x128xf32>,
    return
  }
  func.func @transform_0(%arg0: i32) -> (i32, i32, i32) {
    %c0_i32 = arith.constant 0 : i32
    %c0_i32_0 = arith.constant 0 : i32
    %c0_i32_1 = arith.constant 0 : i32
    return %arg0, %c0_i32, %c0_i32_0 : i32, i32, i32
  }
  func.func @transform_1(%arg0: i32) -> (i32, i32, i32) {
    %c0_i32 = arith.constant 0 : i32
    %c0_i32_0 = arith.constant 0 : i32
    %c0_i32_1 = arith.constant 0 : i32
    %c0_i32_2 = arith.constant 0 : i32
    return %c0_i32, %c0_i32_0, %c0_i32_1 : i32, i32, i32
  }
  func.func @transform_2(%arg0: i32) -> (i32, i32) {
    %c0_i32 = arith.constant 0 : i32
    %c0_i32_0 = arith.constant 0 : i32
    %c0_i32_1 = arith.constant 0 : i32
    return %c0_i32, %c0_i32_0 : i32, i32
  }
  func.func @transform_3(%arg0: i32) -> (i32, i32, i32) {
    %c0_i32 = arith.constant 0 : i32
    %c0_i32_0 = arith.constant 0 : i32
    %c0_i32_1 = arith.constant 0 : i32
    %c0_i32_2 = arith.constant 0 : i32
    return %c0_i32, %c0_i32_0, %c0_i32_1 : i32, i32, i32
  }
  func.func @transform_4(%arg0: i32) -> (i32, i32) {
    %c0_i32 = arith.constant 0 : i32
    %c0_i32_0 = arith.constant 0 : i32
    %c0_i32_1 = arith.constant 0 : i32
    return %c0_i32, %c0_i32_0 : i32, i32
  }
  func.func @transform_5(%arg0: i32) -> (i32, i32, i32) {
    %c0_i32 = arith.constant 0 : i32
    %c0_i32_0 = arith.constant 0 : i32
    %c0_i32_1 = arith.constant 0 : i32
    %c0_i32_2 = arith.constant 0 : i32
    return %c0_i32, %c0_i32_0, %c0_i32_1 : i32, i32, i32
  }
  func.func @transform_6(%arg0: i32) -> (i32, i32) {
    %c0_i32 = arith.constant 0 : i32
    %c0_i32_0 = arith.constant 0 : i32
    %c0_i32_1 = arith.constant 0 : i32
    return %c0_i32, %c0_i32_0 : i32, i32
  }
  func.func @transform_7(%arg0: i32) -> (i32, i32) {
    %c0_i32 = arith.constant 0 : i32
    %c0_i32_0 = arith.constant 0 : i32
    %c0_i32_1 = arith.constant 0 : i32
    return %c0_i32, %c0_i32_0 : i32, i32
  }
  func.func @transform_8(%arg0: i32) -> (i32, i32) {
    %c0_i32 = arith.constant 0 : i32
    %c0_i32_0 = arith.constant 0 : i32
    %c0_i32_1 = arith.constant 0 : i32
    return %c0_i32, %c0_i32_0 : i32, i32
  }
  func.func @transform_9(%arg0: i32) -> (i32, i32) {
    %c0_i32 = arith.constant 0 : i32
    %c0_i32_0 = arith.constant 0 : i32
    %c0_i32_1 = arith.constant 0 : i32
    return %c0_i32, %c0_i32_0 : i32, i32
  }
  func.func @transform_10(%arg0: i32) -> (i32, i32) {
    %c0_i32 = arith.constant 0 : i32
    %c0_i32_0 = arith.constant 0 : i32
    %c0_i32_1 = arith.constant 0 : i32
    return %c0_i32, %c0_i32_0 : i32, i32
  }
  func.func @transform_11(%arg0: i32) -> (i32, i32) {
    %c0_i32 = arith.constant 0 : i32
    %c0_i32_0 = arith.constant 0 : i32
    %c0_i32_1 = arith.constant 0 : i32
    return %c0_i32, %c0_i32_0 : i32, i32
  }
  func.func @transform_12(%arg0: i32) -> (i32, i32, i32) {
    %c0_i32 = arith.constant 0 : i32
    %c0_i32_0 = arith.constant 0 : i32
    %c0_i32_1 = arith.constant 0 : i32
    return %arg0, %c0_i32, %c0_i32_0 : i32, i32, i32
  }
}

</mosaic_0001>

<bundles_post_ra>
// kernel: tpu_custom_call.1
= control target key start
LH: loop header
LB: loop body
LE: loop exit
PB: predicated region body
PF: predicated region fallthrough
CT: control target
= control target key end

     0   :  { %s3946_s0 = inlined_call_operand.hbm [shape: f32[2,8,64], index: 0, kind: input, shape index: {}]   ;;  %s3947_s1 = inlined_call_operand.hbm [shape: bf16[3,64,256], index: 1, kind: input, shape index: {}]   ;;  %s3948_s2 = inlined_call_operand.vmem [shape: f32[1,256], index: 2, kind: input, shape index: {}]   ;;  %s3949_s3 = inlined_call_operand.hbm [shape: bf16[3,128,256], index: 3, kind: input, shape index: {}]   ;;  %s3950_s4 = inlined_call_operand.vmem [shape: f32[1,256], index: 4, kind: input, shape index: {}]   ;;  %s3951_s5 = inlined_call_operand.hbm [shape: bf16[3,256,256], index: 5, kind: input, shape index: {}]   ;;  %s3952_s6 = inlined_call_operand.vmem [shape: f32[1,256], index: 6, kind: input, shape index: {}]   ;;  %s3953_s7 = inlined_call_operand.hbm [shape: bf16[256,128], index: 7, kind: input, shape index: {}]   ;;  %s3954_s8 = inlined_call_operand.vmem [shape: f32[1,128], index: 8, kind: input, shape index: {}]   ;;  %s3955_s9 = inlined_call_operand.hbm [shape: f32[128,128], index: 9, kind: input, shape index: {}]   ;;  %s3956_s10 = inlined_call_operand.vmem [shape: f32[1,128], index: 10, kind: input, shape index: {}]   ;;  %s3957_s11 = inlined_call_operand.vmem [shape: f32[1,128], index: 11, kind: input, shape index: {}]   ;;  %s3958_s12 = inlined_call_operand.hbm [shape: f32[2,4,128], index: 12, kind: output, shape index: {}]  }
   0x1   :  { %3965 = sst [smem:[#allocation24_spill]] %s3947_s1 }
   0x2   :  { %3966 = sst [smem:[#allocation25_spill]] %s3949_s3 }
   0x3   :  { %3967 = sst [smem:[#allocation26_spill]] %s3951_s5 }
   0x4   :  { %3968 = sst [smem:[#allocation27_spill]] %s3953_s7 }
   0x5   :  { %3969 = sst [smem:[#allocation28_spill]] %s3955_s9 }
   0x6   :  { %17 = vsyncpa [#allocation6], 0 }
   0x7   :  { %19 = vsyncpa [#allocation6 + $0x1], 0 }
   0x8   :  { %20 = vsyncpa [#allocation9], 0 }
   0x9   :  { %21 = vsyncpa [#allocation12], 0 }
   0xa   :  { %22 = vsyncpa [#allocation15], 0 }
   0xb   :  { %23 = vsyncpa [#allocation7], 0 }
   0xc   :  { %25 = vsyncpa [#allocation7 + $0x1], 0  ;;  %s3603_s21 = smov 0   ;;  %s3605_s22 = smov 0  }
   0xd   :  { %s3607_s23 = smov 0   ;;  %s3609_s24 = smov 0  }
   0xe LB: > { %3970 = sst [smem:[#allocation22_spill]] %s3518_s23  ;;  %s3524_s25 = smov [#allocation8]   ;;  %s3522_s24 = sphi %s3609_s24, %s4000_s24   ;;  %s3518_s23 = sphi %s3607_s23, %s3997_s23   ;;  %s3514_s22 = sphi %s3605_s22, %s3999_s22   ;;  %s3510_s21 = sphi %s3603_s21, %s3998_s21  }
   0xf   : > { %s331_s26 = sshll.u32 %s3524_s25, 4  ;;  %s3624_s27 = sadd.s32 4294967295, %s3522_s24   ;;  %s332_s26 = int_to_ptr.vmem [resolvable:$true] %s331_s26 }
  0x10   : > { %p2547_p0 = scmp.ge.s32.totalorder %s3522_s24, 1  ;;  %p3960_p1 = scmp.eq.s32.totalorder %s3624_s27, 0 }
  0x11   : > { %p319_p2 = scmp.lt.s32.totalorder %s3522_s24, 3  ;;  %s3525_s29 = smov [#allocation11]  }
  0x12   : > { %s363_s30 = sshll.u32 %s3525_s29, 4  ;;  %s3526_s14 = smov [#allocation10]   ;;  %s3642_s30 = int_to_ptr.vmem [resolvable:$true] %s363_s30 }
  0x13   : > { %p3629_p3 = pnand %p2547_p0, %p319_p2  ;;  %s347_s15 = sshll.u32 %s3526_s14, 4  ;;  %s3644_s15 = int_to_ptr.vmem [resolvable:$true] %s347_s15 }
  0x14   : > { %s3299_s17 = scalar_lea.vmem %s332_s26, 3072  ;;  %p3307_p11 = scmp.lt.s32.totalorder %s332_s26, %s332_s26 }
  0x15   : > { %s3971_s28 = scalar_select %p3629_p3, 1, 0 }
  0x16   : > { %p2914_p5 = pneg %p3629_p3  ;;  %p3300_p8 = scmp.ne.s32.totalorder %s332_s26, %s3299_s17 }
  0x17   : > { %p3308_p12 = scmp.lt.s32.totalorder %s3299_s17, %s3299_s17 }
  0x18   : > { %p3638_p6 = pnand %p2914_p5, %p3960_p1 }
  0x19   : > { %p3309_p13 = por %p3308_p12, %p3307_p11 }
  0x1a   : > { %p3648_p7 = pneg %p3638_p6 }
  0x1c   : > { %p3302_p9 = pnand %p3300_p8, %p3648_p7 }
  0x1e   : > { %p3303_p10 = pneg %p3302_p9 }
  0x20   : > { %p3310_p0 = pnand %p3309_p13, %p3303_p10 }
  0x22   : > { %3313 = shalt.err (!%p3310_p0)
}
  0x23   : > { %s3959_s18 = smov 128   ;;  %s3528_s19 = smov 8  }
  0x24   : > { %s3974_s1 = sld [smem:[#allocation24_spill]]  ;;  %s3325_s29 = scalar_lea.vmem %s3642_s30, 12288 }
  0x25   : > { %p3326_p2 = scmp.ne.s32.totalorder %s3642_s30, %s3325_s29  ;;  %p3333_p9 = scmp.lt.s32.totalorder %s3642_s30, %s3642_s30 }
  0x26   : > { %p3334_p10 = scmp.lt.s32.totalorder %s3325_s29, %s3325_s29 }
  0x27   : > { %p3328_p5 = pnand %p3326_p2, %p3648_p7 }
  0x28   : > { %p3335_p11 = por %p3334_p10, %p3333_p9 }
  0x29   : > { %p3329_p8 = pneg %p3328_p5 }
  0x2a   : > { %2917 = dma.hbm_to_vmem [thread:$0]  (!%p3638_p6), %s3974_s1, 3072, %s332_s26, [#allocation9], %s3959_s18, %s3959_s18, %s3528_s19  }
  0x2b   : > { %p3336_p12 = pnand %p3335_p11, %p3329_p8 }
  0x2d   : > { %3339 = shalt.err (!%p3336_p12)
}
  0x2e   : > { %s3975_s5 = sld [smem:[#allocation26_spill]]  ;;  %s3351_s26 = scalar_lea.vmem %s3644_s15, 6144 }
  0x2f   : > { %p3352_p13 = scmp.ne.s32.totalorder %s3644_s15, %s3351_s26  ;;  %p3359_p5 = scmp.lt.s32.totalorder %s3644_s15, %s3644_s15 }
  0x30   : > { %p3360_p8 = scmp.lt.s32.totalorder %s3351_s26, %s3351_s26 }
  0x31   : > { %p3354_p0 = pnand %p3352_p13, %p3648_p7 }
  0x32   : > { %p3361_p9 = por %p3360_p8, %p3359_p5 }
  0x33   : > { %p3355_p2 = pneg %p3354_p0 }
  0x34   : > { %2923 = dma.hbm_to_vmem [thread:$0]  (!%p3638_p6), %s3975_s5, 12288, %s3642_s30, [#allocation12], %s3959_s18, %s3959_s18, %s3528_s19  }
  0x35   : > { %p3362_p10 = pnand %p3361_p9, %p3355_p2 }
  0x37   : > { %3365 = shalt.err (!%p3362_p10)
}
  0x38   : > { %s3976_s3 = sld [smem:[#allocation25_spill]]  ;;  %s3529_s30 = smov [#allocation13]  }
  0x39   : > { %s379_s29 = sshll.u32 %s3529_s30, 4  ;;  %s380_s29 = int_to_ptr.vmem [resolvable:$true] %s379_s29 }
  0x3a   : > { %s3377_s14 = scalar_lea.vmem %s380_s29, 2048  ;;  %p3385_p0 = scmp.lt.s32.totalorder %s380_s29, %s380_s29 }
  0x3b   : > { %p3378_p11 = scmp.ne.s32.totalorder %s380_s29, %s3377_s14  ;;  %p3386_p2 = scmp.lt.s32.totalorder %s3377_s14, %s3377_s14 }
  0x3d   : > { %p3380_p12 = pnand %p3378_p11, %p3648_p7  ;;  %p3387_p5 = por %p3386_p2, %p3385_p0 }
  0x3e   : > { %2920 = dma.hbm_to_vmem [thread:$0]  (!%p3638_p6), %s3976_s3, 6144, %s3644_s15, [#allocation9], %s3959_s18, %s3959_s18, %s3528_s19  }
  0x3f   : > { %p3381_p13 = pneg %p3380_p12 }
  0x41   : > { %p3388_p8 = pnand %p3387_p5, %p3381_p13 }
  0x43   : > { %3391 = shalt.err (!%p3388_p8)
}
  0x44   : > { %s3530_s17 = smov 64   ;;  %s3531_s26 = smov 4  }
  0x45   : > { %s3977_s7 = sld [smem:[#allocation27_spill]]  ;;  %s3532_s25 = smov [#allocation14]  }
  0x46   : > { %s395_s30 = sshll.u32 %s3532_s25, 4  ;;  %s396_s30 = int_to_ptr.vmem [resolvable:$true] %s395_s30 }
  0x47   : > { %s3403_s18 = scalar_lea.vmem %s396_s30, 2048  ;;  %p3411_p12 = scmp.lt.s32.totalorder %s396_s30, %s396_s30 }
  0x48   : > { %p3404_p9 = scmp.ne.s32.totalorder %s396_s30, %s3403_s18  ;;  %p3412_p13 = scmp.lt.s32.totalorder %s3403_s18, %s3403_s18 }
  0x4a   : > { %p3406_p10 = pnand %p3404_p9, %p3648_p7  ;;  %p3413_p0 = por %p3412_p13, %p3411_p12 }
  0x4b   : > { %2926 = dma.hbm_to_vmem [thread:$0]  (!%p3638_p6), %s3977_s7, 2048, %s380_s29, [#allocation12], %s3530_s17, %s3530_s17, %s3531_s26  }
  0x4c   : > { %p3407_p11 = pneg %p3406_p10 }
  0x4e   : > { %p3414_p2 = pnand %p3413_p0, %p3407_p11 }
  0x50   : > { %3417 = shalt.err (!%p3414_p2)
}
  0x51   : > { %s3978_s14 = smov 128   ;;  %s3979_s9 = sld [smem:[#allocation28_spill]] }
  0x52   : > { %s2546_s13 = sadd.s32 4294967294, %s3522_s24   ;;  %s3711_s16 = sadd.s32 1, %s3522_s24  }
  0x53   : > { %s38_s18 = sadd.s32 1, %s3518_s23  ;;  %s35_s17 = ssub.s32 %s3522_s24, %s3711_s16 }
  0x54   : > { %p45_p7 = scmp.ne.s32.totalorder %s3518_s23, %s3514_s22  ;;  %p36_p5 = scmp.eq.s32.totalorder %s35_s17, 0 }
  0x55   : > { %p46_p8 = scmp.eq.s32.totalorder %s3522_s24, 0  ;;  %p51_p9 = scmp.ne.s32.totalorder %s3514_s22, %s3510_s21 }
  0x56   : > { %p306_p10 = scmp.eq.s32.totalorder %s3624_s27, 1  ;;  %p312_p13 = scmp.eq.s32.totalorder %s2546_s13, 1 }
  0x57   : > { %2929 = dma.hbm_to_vmem [thread:$0]  (!%p3638_p6), %s3979_s9, 2048, %s396_s30, [#allocation15], %s3978_s14, %s3978_s14, %s3528_s19  }
  0x58   : > { %s3723_s26 = scalar_select %p36_p5, %s3518_s23, %s38_s18  }
  0x59   : > { %p47_p11 = por %p46_p8, %p45_p7  ;;  %p3727_p12 = por %p3960_p1, %p51_p9 }
  0x5a   : > { %3980 = sst [smem:[#allocation23_spill]] %s3723_s26  ;;  %p3731_p6 = por %p306_p10, %p45_p7 }
  0x5b   : > { %s3981_s15 = scalar_select %p3727_p12, 1, 0 }
  0x5c   : > { %s3982_s19 = scalar_select %p3731_p6, 1, 0 }
  0x5d   : > { %p2943_p0 = scmp.lt.s32.totalorder %s3522_s24, 2  ;;  %s415_s25 = sand.u32 1, %s3518_s23  }
  0x5e   : > { %p3737_p2 = por %p312_p13, %p51_p9  ;;  %s2554_s14 = sshll.u32 %s415_s25, 3 }
  0x5f   : > { %s2555_s20 = sshll.u32 %s3522_s24, 7  ;;  %s419_s1 = scalar_lea.vmem [#allocation5], %s2554_s14 }
  0x60   : > { %s3983_s30 = scalar_select %p3737_p2, 1, 0 }
  0x61   : > { %s3745_s17 = scalar_lea.hbm %s3946_s0, %s2555_s20  ;;  %s426_s3 = sshll.u32 %s419_s1, 4  ;;  %s427_s3 = int_to_ptr.vmem [resolvable:$true] %s426_s3 }
  0x62   : > { %p3747_p7 = pnand %p2943_p0, %p47_p11  ;;  %s416_s5 = scalar_lea.sflag [#allocation6], %s415_s25 }
  0x63   : > { %s3418_s7 = scalar_lea.hbm %s3745_s17, 128  ;;  %s3423_s18 = scalar_lea.hbm %s3946_s0, 256 }
  0x64   : > { %p3419_p5 = scmp.ne.s32.totalorder %s3745_s17, %s3418_s7  ;;  %p3420_p8 = pneg %p3747_p7 }
  0x65   : > { %p3424_p11 = scmp.lt.s32.totalorder %s3745_s17, %s3946_s0  ;;  %p3425_p13 = scmp.lt.s32.totalorder %s3423_s18, %s3418_s7 }
  0x66   : > { %p3421_p9 = pnand %p3420_p8, %p3419_p5 }
  0x67   : > { %p3426_p0 = por %p3425_p13, %p3424_p11 }
  0x68   : > { %p3422_p10 = pneg %p3421_p9 }
  0x6a   : > { %p3427_p4 = pnand %p3426_p0, %p3422_p10 }
  0x6c   : > { %3430 = shalt.err (!%p3427_p4)
}
  0x6d   : > { %s3431_s1 = scalar_lea.vmem %s427_s3, 128  ;;  %s3533_s25 = smov [#allocation5]  }
  0x6e   : > { %p3432_p1 = scmp.ne.s32.totalorder %s427_s3, %s3431_s1  ;;  %s3436_s26 = sshll.u32 %s3533_s25, 4  ;;  %s3437_s26 = int_to_ptr.vmem [resolvable:$false] %s3436_s26 }
  0x6f   : > { %s3438_s23 = scalar_lea.vmem %s3437_s26, 256  ;;  %p3439_p5 = scmp.lt.s32.totalorder %s427_s3, %s3437_s26 }
  0x70   : > { %p3434_p2 = pnand %p3432_p1, %p3420_p8  ;;  %p3440_p9 = scmp.lt.s32.totalorder %s3438_s23, %s3431_s1 }
  0x72   : > { %p3435_p6 = pneg %p3434_p2  ;;  %p3441_p12 = por %p3440_p9, %p3439_p5 }
  0x74   : > { %p3442_p3 = pnand %p3441_p12, %p3435_p6 }
  0x76   : > { %3445 = shalt.err (!%p3442_p3)
}
  0x77   : > { %2933 = dma.hbm_to_vmem [thread:$0]  (!%p3747_p7), %s3745_s17, 128, %s427_s3, %s416_s5  }
  0x78   : > { %p3985_p10 = scmp.ne.s32.totalorder %s3971_s28, 0 }
  0x79   : > { %s3768_s7 = sand.u32 (!%p3985_p10), 1, %s3514_s22   ;;  %p3986_p1 = scmp.ne.s32.totalorder (!%p3985_p10), %s3981_s15, 0 }
  0x7a   : > { %435 = sbr.rel (%p3985_p10) target bundleno = 1625 (0x659), region = 68  ;;  %s2557_s9 = sshll.u32 (!%p3985_p10), %s3768_s7, 3 }
  0x7b   : > { %s438_s20 = scalar_lea.sflag (!%p3985_p10), [#allocation6], %s3768_s7  ;;  %s3772_s26 = scalar_lea.vmem (!%p3985_p10), [#allocation5], %s2557_s9 }
  0x7f   : > { %3489 = dma.done.wait (%p3986_p1), %s438_s20, 128  }
  0x80   : > { %3491 = vsyncadd (%p3986_p1), %s438_s20, 4294967168  ;;  %p3987_p3 = scmp.eq.s32.totalorder %s3624_s27, 0 }
  0x82   : > { %3493 = dma.done.wait (%p3987_p3), [#allocation9], 9216   ;;  %p3988_p4 = pmov %p3987_p3 }
  0x83   : > { %p3989_p12 = pmov %p3987_p3 }
  0x84   : > { %3495 = vsyncadd (%p3988_p4), [#allocation9], 4294958080 }
  0x85   : > { %3497 = dma.done.wait (%p3989_p12), [#allocation12], 14336   ;;  %p3990_p6 = pmov %p3987_p3 }
  0x86   : > { %p3991_p2 = pmov %p3987_p3 }
  0x87   : > { %3499 = vsyncadd (%p3990_p6), [#allocation12], 4294952960 }
  0x88   : > { %3501 = dma.done.wait (%p3991_p2), [#allocation15], 2048   ;;  %p3992_p7 = pmov %p3991_p2 }
  0x89   : > { %vm503_vm0 = vcmask 516096   ;;  %v3534_v0 = vmov 0.0   ;;  %v3535_v1 = vmov 0   ;;  %v2994_v2 = vld [vmem:[#allocation8 + $0x74] ss:$8 sps:$4 sm:$0xff]   ;;  %vm518_vm1 = vcmask 523264  }
  0x8a   : > { %3503 = vsyncadd (%p3992_p7), [#allocation15], 4294965248  ;;  %506 = vst [vmem:[#allocation3] sm:$0x1] %v3534_v0  ;;  %616 = vmatprep.mubr.bf16.mxu0 %v3535_v1  ;;  %700 = vmatprep.mubr.bf16.mxu1 %v3535_v1  ;;  %v2996_v3 = vld [vmem:[#allocation8 + $0x34] ss:$8 sps:$4 sm:$0xff]   ;;  %v508_v33 = vlaneseq }
  0x8b   : > { %504 = vst.msk [vmem:[#allocation2] sm:$0x1] %vm503_vm0, %v3534_v0  ;;  %505 = vst.msk [vmem:[#allocation2 + $0x9] sm:$0x1] %vm503_vm0, %v3534_v0  ;;  %592 = vmatprep.subr.bf16.mxu0 %v2994_v2  ;;  %v2998_v4 = vld [vmem:[#allocation8 + $0x70] ss:$8 sps:$4 sm:$0xff]   ;;  %676 = vmatprep.subr.bf16.mxu1 %v2996_v3 }
  0x8c   : > { %v2999_v5 = vld [vmem:[#allocation8 + $0x30] ss:$8 sps:$4 sm:$0xff]   ;;  %v3000_v6 = vld [vmem:[#allocation8 + $0x64] ss:$8 sps:$4 sm:$0xff]   ;;  %593 = vmatpush1.bf16.msra.mxu0 %v2998_v4  ;;  %v3004_v8 = vld [vmem:[#allocation8 + $0x60] ss:$8 sps:$4 sm:$0xff]  }
  0x8d   : > { %677 = vmatpush1.bf16.msra.mxu1 %v2999_v5  ;;  %v3002_v7 = vld [vmem:[#allocation8 + $0x24] ss:$8 sps:$4 sm:$0xff]   ;;  %594 = vmatprep.subr.bf16.mxu0 %v3000_v6  ;;  %v3005_v9 = vld [vmem:[#allocation8 + $0x20] ss:$8 sps:$4 sm:$0xff]   ;;  %v3006_v10 = vld [vmem:[#allocation8 + $0x54] ss:$8 sps:$4 sm:$0xff]  }
  0x8e   : > { %678 = vmatprep.subr.bf16.mxu1 %v3002_v7  ;;  %v3008_v11 = vld [vmem:[#allocation8 + $0x14] ss:$8 sps:$4 sm:$0xff]   ;;  %v3010_v12 = vld [vmem:[#allocation8 + $0x50] ss:$8 sps:$4 sm:$0xff]   ;;  %v3012_v14 = vld [vmem:[#allocation8 + $0x44] ss:$8 sps:$4 sm:$0xff]  }
  0x8f   : > { %v3011_v13 = vld [vmem:[#allocation8 + $0x10] ss:$8 sps:$4 sm:$0xff]   ;;  %v3014_v15 = vld [vmem:[#allocation8 + $0x4] ss:$8 sps:$4 sm:$0xff]   ;;  %v3016_v17 = vld [vmem:[#allocation8 + $0x40] ss:$8 sps:$4 sm:$0xff]  }
  0x90   : > { %595 = vmatpush1.bf16.msra.mxu0 %v3004_v8  ;;  %v517_v16 = vld [vmem:[%s3772_s26] sm:$0xff]  ;;  %v3017_v18 = vld [vmem:[#allocation8] ss:$8 sps:$4 sm:$0xff]   ;;  %v3023_v23 = vld [vmem:[#allocation8 + $0xa4] ss:$8 sps:$4 sm:$0xff]   ;;  %vm510_vm2 = vcmp.lt.s32.totalorder %v508_v33, 256 }
  0x91   : > { %679 = vmatpush1.bf16.msra.mxu1 %v3005_v9  ;;  %596 = vmatprep.subr.bf16.mxu0 %v3006_v10  ;;  %519 = vst.msk [vmem:[#allocation2 + $0x1] sm:$0xff] %vm518_vm1, %v517_v16  ;;  %v3020_v19 = vld [vmem:[#allocation8 + $0xb4] ss:$8 sps:$4 sm:$0xff]   ;;  %v3018_v20 = vld [vmem:[#allocation8 + $0xb0] ss:$8 sps:$4 sm:$0xff]   ;;  %vm3536_vm3 = vmmov 0  }
  0x92   : > { %680 = vmatprep.subr.bf16.mxu1 %v3008_v11  ;;  %v3021_v26 = vld [vmem:[#allocation8 + $0xa0] ss:$8 sps:$4 sm:$0xff]   ;;  %v3026_v27 = vld [vmem:[#allocation8 + $0x94] ss:$8 sps:$4 sm:$0xff]   ;;  %v3024_v28 = vld [vmem:[#allocation8 + $0x90] ss:$8 sps:$4 sm:$0xff]  }
  0x93   : > { %v3029_v29 = vld [vmem:[#allocation8 + $0x84] ss:$8 sps:$4 sm:$0xff]   ;;  %v3027_v30 = vld [vmem:[#allocation8 + $0x80] ss:$8 sps:$4 sm:$0xff]   ;;  %v3032_v34 = vld [vmem:[#allocation10 + $0xf4] ss:$8 sps:$4 sm:$0xff]  }
  0x94   : > { %597 = vmatpush1.bf16.msra.mxu0 %v3010_v12  ;;  %512 = vst.msk [vmem:[#allocation4] ss:$8 sm:$0x3] %vm510_vm2, %v3534_v0  ;;  %515 = vst.msk [vmem:[#allocation4 + $0x5] ss:$8 sm:$0x3] %vm510_vm2, %v3534_v0 }
  0x95   : > { %681 = vmatpush1.bf16.msra.mxu1 %v3011_v13  ;;  %598 = vmatprep.subr.bf16.mxu0 %v3012_v14  ;;  %v3030_v35 = vld [vmem:[#allocation10 + $0xf0] ss:$8 sps:$4 sm:$0xff]   ;;  %v3035_v36 = vld [vmem:[#allocation10 + $0x74] ss:$8 sps:$4 sm:$0xff]   ;;  %v3038_v38 = vld [vmem:[#allocation10 + $0xe4] ss:$8 sps:$4 sm:$0xff]  }
  0x96   : > { %682 = vmatprep.subr.bf16.mxu1 %v3014_v15  ;;  %v3033_v37 = vld [vmem:[#allocation10 + $0x70] ss:$8 sps:$4 sm:$0xff]   ;;  %v3036_v39 = vld [vmem:[#allocation10 + $0xe0] ss:$8 sps:$4 sm:$0xff]   ;;  %v3041_v40 = vld [vmem:[#allocation10 + $0x64] ss:$8 sps:$4 sm:$0xff]  }
  0x97   : > { %v3039_v41 = vld [vmem:[#allocation10 + $0x60] ss:$8 sps:$4 sm:$0xff]   ;;  %v3044_v42 = vld [vmem:[#allocation10 + $0xd4] ss:$8 sps:$4 sm:$0xff]   ;;  %v3042_v43 = vld [vmem:[#allocation10 + $0xd0] ss:$8 sps:$4 sm:$0xff]  }
  0x98   : > { %599 = vmatpush1.bf16.msra.mxu0 %v3016_v17  ;;  %v530_v21 = vld [vmem:[#allocation2 + $0x1] sm:$0xff]  ;;  %v3047_v44 = vld [vmem:[#allocation10 + $0x54] ss:$8 sps:$4 sm:$0xff]   ;;  %v3045_v45 = vld [vmem:[#allocation10 + $0x50] ss:$8 sps:$4 sm:$0xff]   ;;  %v809_v13 = vshrl.u32 %v508_v33, 7 }
  0x99   : > { %683 = vmatpush1.bf16.msra.mxu1 %v3017_v18  ;;  %771 = vmatprep.subr.bf16.mxu0 %v3020_v19  ;;  %v520_v22 = vld [vmem:[#allocation2] sm:$0xff]  ;;  %v531_v24 = vpack.c.bf16 %v530_v21, %v530_v21  ;;  %v3056_v50 = vld [vmem:[#allocation10 + $0xb4] ss:$8 sps:$4 sm:$0xff]   ;;  %v3054_v51 = vld [vmem:[#allocation10 + $0xb0] ss:$8 sps:$4 sm:$0xff]   ;;  %s2563_s18 = sshll.u32 %s3768_s7, 2 }
  0x9a   : > { %v521_v25 = vpack.c.bf16 %v520_v22, %v520_v22  ;;  %v709_v31 = vld [vmem:[#allocation2 + $0x2] sm:$0xff]  ;;  %954 = vmatprep.subr.bf16.mxu1 %v3032_v34  ;;  %v3059_v52 = vld [vmem:[#allocation10 + $0x34] ss:$8 sps:$4 sm:$0xff]   ;;  %v3057_v53 = vld [vmem:[#allocation10 + $0x30] ss:$8 sps:$4 sm:$0xff]   ;;  %v3807_v14 = vsub.s32 0, %v809_v13 }
  0x9b   : > { %2572 = vmatmul.mubr.msk.bf16.vlgmr.msra.gmra.mxu0 %vm518_vm1, %v531_v24  ;;  %v710_v32 = vpack.c.bf16 %v709_v31, %v709_v31  ;;  %v3050_v46 = vld [vmem:[#allocation10 + $0xc4] ss:$8 sps:$4 sm:$0xff]   ;;  %v3048_v47 = vld [vmem:[#allocation10 + $0xc0] ss:$8 sps:$4 sm:$0xff]   ;;  %v3068_v58 = vld [vmem:[#allocation10 + $0x94] ss:$8 sps:$4 sm:$0xff]  }
  0x9c   : > { %2581 = vmatmul.mubr.msk.bf16.vlgmr.msra.gmra.mxu1 %vm518_vm1, %v521_v25  ;;  %772 = vmatpush1.bf16.msra.mxu0 %v3018_v20  ;;  %v3053_v48 = vld [vmem:[#allocation10 + $0x44] ss:$8 sps:$4 sm:$0xff]   ;;  %v3051_v49 = vld [vmem:[#allocation10 + $0x40] ss:$8 sps:$4 sm:$0xff]   ;;  %v3066_v59 = vld [vmem:[#allocation10 + $0x90] ss:$8 sps:$4 sm:$0xff]  }
  0x9d   : > { %795 = vmatprep.mubr.bf16.mxu0 %v3535_v1  ;;  %773 = vmatprep.subr.bf16.mxu0 %v3023_v23  ;;  %v3062_v54 = vld [vmem:[#allocation10 + $0xa4] ss:$8 sps:$4 sm:$0xff]   ;;  %v3060_v55 = vld [vmem:[#allocation10 + $0xa0] ss:$8 sps:$4 sm:$0xff]   ;;  %v3069_v60 = vld [vmem:[#allocation10 + $0x10] ss:$8 sps:$4 sm:$0xff]  }
  0x9e   : > { %986 = vmatprep.mubr.bf16.mxu1 %v3535_v1  ;;  %955 = vmatpush1.bf16.msra.mxu1 %v3030_v35  ;;  %v3065_v56 = vld [vmem:[#allocation10 + $0x24] ss:$8 sps:$4 sm:$0xff]   ;;  %v3063_v57 = vld [vmem:[#allocation10 + $0x20] ss:$8 sps:$4 sm:$0xff]   ;;  %v3071_v61 = vld [vmem:[#allocation10 + $0x14] ss:$8 sps:$4 sm:$0xff]  }
  0x9f   : > { %956 = vmatprep.subr.bf16.mxu1 %v3038_v38  ;;  %v3074_v62 = vld [vmem:[#allocation10 + $0x84] ss:$8 sps:$4 sm:$0xff]   ;;  %v3072_v63 = vld [vmem:[#allocation10 + $0x80] ss:$8 sps:$4 sm:$0xff]   ;;  %v3080_v4 = vld [vmem:[#allocation10 + $0x174] ss:$8 sps:$4 sm:$0xff]  }
  0xa0   : > { %774 = vmatpush1.bf16.msra.mxu0 %v3021_v26  ;;  %v3077_v2 = vld [vmem:[#allocation10 + $0x4] ss:$8 sps:$4 sm:$0xff]   ;;  %v3075_v3 = vld [vmem:[#allocation10] ss:$8 sps:$4 sm:$0xff]   ;;  %v3812_v16 = vsub.s32 1, %v809_v13  ;;  %s2761_s20 = sshll.u32 %s3624_s27, 6 }
  0xa1   : > { %775 = vmatprep.subr.bf16.mxu0 %v3026_v27  ;;  %v806_v15 = vld [vmem:[%s3948_s2] sm:$0x3]  ;;  %v3123_v13 = vld [vmem:[#allocation11 + $0x30] ss:$8 sps:$4 sm:$0xff]   ;;  %s501_s26 = scalar_lea.vmem [#allocation16], %s2563_s18  ;;  %s2426_s28 = scalar_lea.hbm %s3958_s12, %s2761_s20 }
  0xa2   : > { %957 = vmatpush1.bf16.msra.mxu1 %v3036_v39  ;;  %v811_v18 = vrot.slane %v806_v15, %v3807_v14  ;;  %v815_v22 = vrot.slane %v806_v15, %v3812_v16  ;;  %v3128_v15 = vld [vmem:[#allocation11 + $0x144] ss:$8 sps:$4 sm:$0xff]   ;;  %s2428_s3 = sshll.u32 %s501_s26, 4  ;;  %s2415_s15 = scalar_lea.sflag [#allocation7], %s3768_s7  ;;  %s2429_s3 = int_to_ptr.vmem [resolvable:$true] %s2428_s3 }
  0xa3   : > { %958 = vmatprep.subr.bf16.mxu1 %v3044_v42  ;;  %s3446_s17 = scalar_lea.vmem %s2429_s3, 64  ;;  %p3993_p11 = scmp.ne.s32.totalorder %s3982_s19, 0 }
  0xa4   : > { %776 = vmatpush1.bf16.msra.mxu0 %v3024_v28  ;;  %p3447_p8 = scmp.ne.s32.totalorder %s2429_s3, %s3446_s17  ;;  %s3537_s13 = smov [#allocation16]  }
  0xa5   : > { %777 = vmatprep.subr.bf16.mxu0 %v3029_v29  ;;  %s3450_s29 = sshll.u32 %s3537_s13, 4  ;;  %s3451_s29 = int_to_ptr.vmem [resolvable:$false] %s3450_s29 }
  0xa6   : > { %959 = vmatpush1.bf16.msra.mxu1 %v3042_v43  ;;  %p3448_p13 = pnand %p3447_p8, %p3993_p11  ;;  %s3452_s27 = scalar_lea.vmem %s3451_s29, 128 }
  0xa7   : > { %960 = vmatprep.subr.bf16.mxu1 %v3050_v46  ;;  %v3081_v46 = vld [vmem:[#allocation10 + $0x160] ss:$8 sps:$4 sm:$0xff]   ;;  %p3453_p5 = scmp.lt.s32.totalorder %s2429_s3, %s3451_s29  ;;  %p3454_p9 = scmp.lt.s32.totalorder %s3452_s27, %s3446_s17 }
  0xa8   : > { %778 = vmatpush1.bf16.msra.mxu0 %v3027_v30  ;;  %p3449_p0 = pneg %p3448_p13 }
  0xa9   : > { %1075 = vmatprep.subr.bf16.mxu0 %v3035_v36  ;;  %p3455_p10 = por %p3454_p9, %p3453_p5 }
  0xaa   : > { %961 = vmatpush1.bf16.msra.mxu1 %v3048_v47  ;;  %v3086_v47 = vld [vmem:[#allocation10 + $0x154] ss:$8 sps:$4 sm:$0xff]  }
  0xab   : > { %2590 = vmatmul.mubr.msk.bf16.vlgmr.msra.gmra.mxu0 %vm518_vm1, %v710_v32  ;;  %962 = vmatprep.subr.bf16.mxu1 %v3056_v50  ;;  %v3087_v50 = vld [vmem:[#allocation10 + $0x140] ss:$8 sps:$4 sm:$0xff]   ;;  %p3456_p1 = pnand %p3455_p10, %p3449_p0 }
  0xac   : > { %1107 = vmatprep.mubr.bf16.mxu0 %v3535_v1  ;;  %1076 = vmatpush1.bf16.msra.mxu0 %v3033_v37 }
  0xad   : > { %1077 = vmatprep.subr.bf16.mxu0 %v3041_v40  ;;  %v3078_v40 = vld [vmem:[#allocation10 + $0x170] ss:$8 sps:$4 sm:$0xff]  }
  0xae   : > { %963 = vmatpush1.bf16.msra.mxu1 %v3054_v51  ;;  %v3092_v51 = vld [vmem:[#allocation10 + $0x134] ss:$8 sps:$4 sm:$0xff]  }
  0xaf   : > { %964 = vmatprep.subr.bf16.mxu1 %v3062_v54  ;;  %v3093_v54 = vld [vmem:[#allocation10 + $0x120] ss:$8 sps:$4 sm:$0xff]  }
  0xb0   : > { %1078 = vmatpush1.bf16.msra.mxu0 %v3039_v41 }
  0xb1   : > { %1079 = vmatprep.subr.bf16.mxu0 %v3047_v44 }
  0xb2   : > { %965 = vmatpush1.bf16.msra.mxu1 %v3060_v55  ;;  %v3098_v55 = vld [vmem:[#allocation10 + $0x114] ss:$8 sps:$4 sm:$0xff]  }
  0xb3   : > { %966 = vmatprep.subr.bf16.mxu1 %v3068_v58 }
  0xb4   : > { %1080 = vmatpush1.bf16.msra.mxu0 %v3045_v45  ;;  %v3083_v45 = vld [vmem:[#allocation10 + $0x164] ss:$8 sps:$4 sm:$0xff]  }
  0xb5   : > { %1081 = vmatprep.subr.bf16.mxu0 %v3053_v48  ;;  %v3084_v48 = vld [vmem:[#allocation10 + $0x150] ss:$8 sps:$4 sm:$0xff]  }
  0xb6   : > { %967 = vmatpush1.bf16.msra.mxu1 %v3066_v59 }
  0xb7   : > { %968 = vmatprep.subr.bf16.mxu1 %v3074_v62  ;;  %v3107_v62 = vld [vmem:[#allocation11 + $0x64] ss:$8 sps:$4 sm:$0xff]  }
  0xb8   : > { %1082 = vmatpush1.bf16.msra.mxu0 %v3051_v49  ;;  %v3089_v49 = vld [vmem:[#allocation10 + $0x144] ss:$8 sps:$4 sm:$0xff]  }
  0xb9   : > { %1083 = vmatprep.subr.bf16.mxu0 %v3059_v52  ;;  %v3090_v52 = vld [vmem:[#allocation10 + $0x130] ss:$8 sps:$4 sm:$0xff]  }
  0xba   : > { %969 = vmatpush1.bf16.msra.mxu1 %v3072_v63  ;;  %v3108_v63 = vld [vmem:[#allocation11 + $0x170] ss:$8 sps:$4 sm:$0xff]  }
  0xbb   : > { %1216 = vmatprep.subr.bf16.mxu1 %v3080_v4  ;;  %v3116_v4 = vld [vmem:[#allocation11 + $0x164] ss:$8 sps:$4 sm:$0xff]  }
  0xbc   : > { %1084 = vmatpush1.bf16.msra.mxu0 %v3057_v53  ;;  %v3095_v53 = vld [vmem:[#allocation10 + $0x124] ss:$8 sps:$4 sm:$0xff]  }
  0xbd   : > { %1085 = vmatprep.subr.bf16.mxu0 %v3065_v56  ;;  %v3101_v56 = vld [vmem:[#allocation10 + $0x104] ss:$8 sps:$4 sm:$0xff]  }
  0xc0   : > { %1086 = vmatpush1.bf16.msra.mxu0 %v3063_v57  ;;  %v3099_v57 = vld [vmem:[#allocation10 + $0x100] ss:$8 sps:$4 sm:$0xff]  }
  0xc1   : > { %1087 = vmatprep.subr.bf16.mxu0 %v3071_v61  ;;  %v3104_v61 = vld [vmem:[#allocation11 + $0x74] ss:$8 sps:$4 sm:$0xff]  }
  0xc4   : > { %1088 = vmatpush1.bf16.msra.mxu0 %v3069_v60  ;;  %v3102_v60 = vld [vmem:[#allocation11 + $0x70] ss:$8 sps:$4 sm:$0xff]  }
  0xc5   : > { %1089 = vmatprep.subr.bf16.mxu0 %v3077_v2  ;;  %v3110_v2 = vld [vmem:[#allocation11 + $0x174] ss:$8 sps:$4 sm:$0xff]  }
  0xc8   : > { %1090 = vmatpush1.bf16.msra.mxu0 %v3075_v3  ;;  %v3105_v3 = vld [vmem:[#allocation11 + $0x60] ss:$8 sps:$4 sm:$0xff]  }
  0xc9   : > { %1544 = vmatprep.subr.bf16.mxu0 %v3110_v2 }
 0x15b   : > { %v618_v5 = vpop.f32.mrf.mxu0 }
 0x15c   : > { %v702_v6 = vpop.f32.mrf.mxu1 }
 0x15d   : > { %v620_v7 = vpop.f32.mrf.mxu0  ;;  %v703_v17 = vadd.f32 %v702_v6, %v618_v5  ;;  %v3113_v5 = vld [vmem:[#allocation11 + $0x54] ss:$8 sps:$4 sm:$0xff]   ;;  %v3114_v6 = vld [vmem:[#allocation11 + $0x160] ss:$8 sps:$4 sm:$0xff]  }
 0x15e   : > { %v704_v8 = vpop.f32.mrf.mxu1 }
 0x15f   : > { %v622_v9 = vpop.f32.mrf.mxu0  ;;  %v705_v20 = vadd.f32 %v704_v8, %v620_v7  ;;  %v3111_v7 = vld [vmem:[#allocation11 + $0x50] ss:$8 sps:$4 sm:$0xff]   ;;  %v3119_v8 = vld [vmem:[#allocation11 + $0x44] ss:$8 sps:$4 sm:$0xff]  }
 0x160   : > { %v706_v10 = vpop.f32.mrf.mxu1  ;;  %v3117_v9 = vld [vmem:[#allocation11 + $0x40] ss:$8 sps:$4 sm:$0xff]  }
 0x161   : > { %v623_v11 = vpop.f32.mrf.mxu0  ;;  %v3122_v10 = vld [vmem:[#allocation11 + $0x154] ss:$8 sps:$4 sm:$0xff]  }
 0x162   : > { %v707_v12 = vpop.f32.mrf.mxu1  ;;  %v3120_v11 = vld [vmem:[#allocation11 + $0x150] ss:$8 sps:$4 sm:$0xff]  }
 0x163   : > { %v3125_v12 = vld [vmem:[#allocation11 + $0x34] ss:$8 sps:$4 sm:$0xff]  }
 0x16b   : > { %v797_v19 = vpop.f32.mrf.mxu0 }
 0x16c   : > { %v804_v21 = vadd.f32 %v797_v19, %v703_v17  ;;  %v3126_v17 = vld [vmem:[#allocation11 + $0x140] ss:$8 sps:$4 sm:$0xff]  }
 0x16d   : > { %v799_v23 = vpop.f32.mrf.mxu0  ;;  %v3129_v19 = vld [vmem:[#allocation11 + $0x20] ss:$8 sps:$4 sm:$0xff]  }
 0x16e   : > { %v818_v24 = vadd.f32 %v811_v18, %v804_v21  ;;  %v805_v25 = vadd.f32 %v799_v23, %v705_v20  ;;  %v3131_v18 = vld [vmem:[#allocation11 + $0x24] ss:$8 sps:$4 sm:$0xff]   ;;  %v3134_v20 = vld [vmem:[#allocation11 + $0x134] ss:$8 sps:$4 sm:$0xff]   ;;  %v3132_v21 = vld [vmem:[#allocation11 + $0x130] ss:$8 sps:$4 sm:$0xff]  }
 0x16f   : > { %v801_v26 = vpop.f32.mrf.mxu0  ;;  %v3135_v23 = vld [vmem:[#allocation11 + $0x10] ss:$8 sps:$4 sm:$0xff]  }
 0x170   : > { %v2591_v27 = vmul.f32 -1.442695, %v818_v24  ;;  %v819_v28 = vadd.f32 %v815_v22, %v805_v25  ;;  %v3137_v22 = vld [vmem:[#allocation11 + $0x14] ss:$8 sps:$4 sm:$0xff]   ;;  %v3138_v25 = vld [vmem:[#allocation11 + $0x120] ss:$8 sps:$4 sm:$0xff]  }
 0x171   : > { %v802_v29 = vpop.f32.mrf.mxu0  ;;  %v3143_v26 = vld [vmem:[#allocation11 + $0x4] ss:$8 sps:$4 sm:$0xff]  }
 0x172   : > { %3262 = vpow2.f32 %v2591_v27  ;;  %v2592_v30 = vmul.f32 -1.442695, %v819_v28  ;;  %v3141_v27 = vld [vmem:[#allocation11] ss:$8 sps:$4 sm:$0xff]   ;;  %v3144_v29 = vld [vmem:[#allocation11 + $0x110] ss:$8 sps:$4 sm:$0xff]  }
 0x174   : > { %3264 = vpow2.f32 %v2592_v30  ;;  %v3149_v30 = vld [vmem:[#allocation11 + $0xf4] ss:$8 sps:$4 sm:$0xff]  }
 0x17f   : > { %v3263_v31 = vpop.eup %3262 }
 0x180   : > { %v826_v32 = vadd.f32 1.0, %v3263_v31  ;;  %v3147_v31 = vld [vmem:[#allocation11 + $0xf0] ss:$8 sps:$4 sm:$0xff]  }
 0x181   : > { %v3265_v33 = vpop.eup %3264 }
 0x182   : > { %3266 = vrcp.f32 %v826_v32  ;;  %v827_v34 = vadd.f32 1.0, %v3265_v33  ;;  %v3152_v32 = vld [vmem:[#allocation11 + $0x104] ss:$8 sps:$4 sm:$0xff]   ;;  %v3150_v33 = vld [vmem:[#allocation11 + $0x100] ss:$8 sps:$4 sm:$0xff]  }
 0x184   : > { %3268 = vrcp.f32 %v827_v34  ;;  %v3155_v34 = vld [vmem:[#allocation11 + $0xe4] ss:$8 sps:$4 sm:$0xff]  }
 0x18f   : > { %v3267_v35 = vpop.eup %3266 }
 0x190   : > { %v832_v37 = vmul.f32 %v3267_v35, %v818_v24  ;;  %v3140_v24 = vld [vmem:[#allocation11 + $0x124] ss:$8 sps:$4 sm:$0xff]   ;;  %v3153_v35 = vld [vmem:[#allocation11 + $0xe0] ss:$8 sps:$4 sm:$0xff]  }
 0x191   : > { %v3269_v36 = vpop.eup %3268 }
 0x192   : > { %v833_v38 = vmul.f32 %v3269_v36, %v819_v28  ;;  %v3146_v28 = vld [vmem:[#allocation11 + $0x114] ss:$8 sps:$4 sm:$0xff]  }
 0x193   : > { %v3158_v36 = vld [vmem:[#allocation11 + $0x1f4] ss:$8 sps:$4 sm:$0xff]  }
 0x194   : > { %v834_v39 = vmax.f32 %v832_v37, %v833_v38  ;;  %v3156_v37 = vld [vmem:[#allocation11 + $0x1f0] ss:$8 sps:$4 sm:$0xff]   ;;  %v3161_v38 = vld [vmem:[#allocation11 + $0xd4] ss:$8 sps:$4 sm:$0xff]  }
 0x196   : > { %835 = vst [vmem:[#allocation3 + $0x1] sm:$0xff] %v834_v39  ;;  %v3159_v39 = vld [vmem:[#allocation11 + $0xd0] ss:$8 sps:$4 sm:$0xff]  }
 0x19d   : > { %v855_v41 = vld [vmem:[#allocation3 + $0x1] ss:$2 sm:$0xf]  ;;  %v836_v42 = vld [vmem:[#allocation3] ss:$2 sm:$0xf] }
 0x19e   : > { %v856_v43 = vpack.c.bf16 %v855_v41, %v855_v41  ;;  %v837_v44 = vpack.c.bf16 %v836_v42, %v836_v42  ;;  %v1117_v58 = vld [vmem:[#allocation3 + $0x2] ss:$2 sm:$0xf]  ;;  %v3162_v41 = vld [vmem:[#allocation11 + $0x1e0] ss:$8 sps:$4 sm:$0xff]  }
 0x19f   : > { %v1118_v59 = vpack.c.bf16 %v1117_v58, %v1117_v58  ;;  %v3167_v42 = vld [vmem:[#allocation11 + $0xc4] ss:$8 sps:$4 sm:$0xff]   ;;  %v3194_v58 = vld [vmem:[#allocation11 + $0x194] ss:$8 sps:$4 sm:$0xff]  }
 0x1a0   : > { %987 = vmatmul.mubr.bf16.vlgmr.msra.gmra.mxu1 %v856_v43  ;;  %1108 = vmatmul.mubr.bf16.vlgmr.msra.gmra.mxu0 %v837_v44  ;;  %v3165_v43 = vld [vmem:[#allocation11 + $0xc0] ss:$8 sps:$4 sm:$0xff]   ;;  %v3170_v44 = vld [vmem:[#allocation11 + $0x1d4] ss:$8 sps:$4 sm:$0xff]  }
 0x1a1   : > { %1217 = vmatpush1.bf16.msra.mxu1 %v3078_v40  ;;  %1248 = vmatprep.mubr.bf16.mxu1 %v3535_v1  ;;  %v3096_v1 = vld [vmem:[#allocation10 + $0x110] ss:$8 sps:$4 sm:$0xff]   ;;  %v3164_v40 = vld [vmem:[#allocation11 + $0x1e4] ss:$8 sps:$4 sm:$0xff]  }
 0x1a2   : > { %1218 = vmatprep.subr.bf16.mxu1 %v3083_v45  ;;  %1545 = vmatpush1.bf16.msra.mxu0 %v3108_v63  ;;  %v3168_v45 = vld [vmem:[#allocation11 + $0x1d0] ss:$8 sps:$4 sm:$0xff]   ;;  %v3200_v63 = vld [vmem:[#allocation11 + $0x274] ss:$8 sps:$4 sm:$0xff]  }
 0x1a3   : > { %1546 = vmatprep.subr.bf16.mxu0 %v3116_v4 }
 0x1a5   : > { %1219 = vmatpush1.bf16.msra.mxu1 %v3081_v46  ;;  %v3173_v46 = vld [vmem:[#allocation11 + $0xb4] ss:$8 sps:$4 sm:$0xff]  }
 0x1a6   : > { %1220 = vmatprep.subr.bf16.mxu1 %v3086_v47  ;;  %1547 = vmatpush1.bf16.msra.mxu0 %v3114_v6  ;;  %v3171_v47 = vld [vmem:[#allocation11 + $0xb0] ss:$8 sps:$4 sm:$0xff]  }
 0x1a7   : > { %1548 = vmatprep.subr.bf16.mxu0 %v3122_v10  ;;  %v1259_v10 = vld [vmem:[%s3950_s4] sm:$0x3] }
 0x1a9   : > { %1221 = vmatpush1.bf16.msra.mxu1 %v3084_v48  ;;  %v3176_v48 = vld [vmem:[#allocation11 + $0x1c4] ss:$8 sps:$4 sm:$0xff]  }
 0x1aa   : > { %1222 = vmatprep.subr.bf16.mxu1 %v3089_v49  ;;  %1549 = vmatpush1.bf16.msra.mxu0 %v3120_v11  ;;  %v3174_v49 = vld [vmem:[#allocation11 + $0x1c0] ss:$8 sps:$4 sm:$0xff]  }
 0x1ab   : > { %1550 = vmatprep.subr.bf16.mxu0 %v3128_v15 }
 0x1ad   : > { %1223 = vmatpush1.bf16.msra.mxu1 %v3087_v50  ;;  %v3179_v50 = vld [vmem:[#allocation11 + $0xa4] ss:$8 sps:$4 sm:$0xff]  }
 0x1ae   : > { %1224 = vmatprep.subr.bf16.mxu1 %v3092_v51  ;;  %1551 = vmatpush1.bf16.msra.mxu0 %v3126_v17  ;;  %v3177_v51 = vld [vmem:[#allocation11 + $0xa0] ss:$8 sps:$4 sm:$0xff]  }
 0x1af   : > { %1552 = vmatprep.subr.bf16.mxu0 %v3134_v20 }
 0x1b1   : > { %1225 = vmatpush1.bf16.msra.mxu1 %v3090_v52  ;;  %v3182_v52 = vld [vmem:[#allocation11 + $0x1b4] ss:$8 sps:$4 sm:$0xff]  }
 0x1b2   : > { %1226 = vmatprep.subr.bf16.mxu1 %v3095_v53  ;;  %1553 = vmatpush1.bf16.msra.mxu0 %v3132_v21  ;;  %v3180_v53 = vld [vmem:[#allocation11 + $0x1b0] ss:$8 sps:$4 sm:$0xff]  }
 0x1b3   : > { %1554 = vmatprep.subr.bf16.mxu0 %v3140_v24 }
 0x1b5   : > { %1227 = vmatpush1.bf16.msra.mxu1 %v3093_v54  ;;  %v3183_v54 = vld [vmem:[#allocation11 + $0x90] ss:$8 sps:$4 sm:$0xff]  }
 0x1b6   : > { %1228 = vmatprep.subr.bf16.mxu1 %v3098_v55  ;;  %1555 = vmatpush1.bf16.msra.mxu0 %v3138_v25  ;;  %v3185_v55 = vld [vmem:[#allocation11 + $0x94] ss:$8 sps:$4 sm:$0xff]  }
 0x1b7   : > { %1556 = vmatprep.subr.bf16.mxu0 %v3146_v28 }
 0x1b9   : > { %1229 = vmatpush1.bf16.msra.mxu1 %v3096_v1  ;;  %v3186_v1 = vld [vmem:[#allocation11 + $0x1a0] ss:$8 sps:$4 sm:$0xff]  }
 0x1ba   : > { %1230 = vmatprep.subr.bf16.mxu1 %v3101_v56  ;;  %1557 = vmatpush1.bf16.msra.mxu0 %v3144_v29  ;;  %v3188_v56 = vld [vmem:[#allocation11 + $0x1a4] ss:$8 sps:$4 sm:$0xff]  }
 0x1bb   : > { %1558 = vmatprep.subr.bf16.mxu0 %v3152_v32 }
 0x1bd   : > { %1231 = vmatpush1.bf16.msra.mxu1 %v3099_v57  ;;  %v3191_v57 = vld [vmem:[#allocation11 + $0x84] ss:$8 sps:$4 sm:$0xff]  }
 0x1be   : > { %1745 = vmatprep.subr.bf16.mxu1 %v3104_v61  ;;  %1559 = vmatpush1.bf16.msra.mxu0 %v3150_v33  ;;  %v3197_v61 = vld [vmem:[#allocation11 + $0x184] ss:$8 sps:$4 sm:$0xff]  }
 0x1bf   : > { %1560 = vmatprep.subr.bf16.mxu0 %v3158_v36 }
 0x1c0   : > { %1249 = vmatmul.mubr.bf16.vlgmr.msra.gmra.mxu1 %v1118_v59  ;;  %v3189_v59 = vld [vmem:[#allocation11 + $0x80] ss:$8 sps:$4 sm:$0xff]  }
 0x1c1   : > { %1746 = vmatpush1.bf16.msra.mxu1 %v3102_v60  ;;  %v3192_v60 = vld [vmem:[#allocation11 + $0x190] ss:$8 sps:$4 sm:$0xff]  }
 0x1c2   : > { %1747 = vmatprep.subr.bf16.mxu1 %v3107_v62  ;;  %1561 = vmatpush2.bf16.msra.mxu0 %v3156_v37  ;;  %v3195_v62 = vld [vmem:[#allocation11 + $0x180] ss:$8 sps:$4 sm:$0xff]  }
 0x1c3   : > { %1562 = vmatprep.subr.bf16.mxu0 %v3164_v40 }
 0x1c5   : > { %1748 = vmatpush1.bf16.msra.mxu1 %v3105_v3 }
 0x1c6   : > { %1749 = vmatprep.subr.bf16.mxu1 %v3113_v5  ;;  %1563 = vmatpush2.bf16.msra.mxu0 %v3162_v41 }
 0x1c7   : > { %1564 = vmatprep.subr.bf16.mxu0 %v3170_v44 }
 0x1c9   : > { %1750 = vmatpush1.bf16.msra.mxu1 %v3111_v7 }
 0x1ca   : > { %1751 = vmatprep.subr.bf16.mxu1 %v3119_v8  ;;  %1565 = vmatpush2.bf16.msra.mxu0 %v3168_v45 }
 0x1cb   : > { %1566 = vmatprep.subr.bf16.mxu0 %v3176_v48 }
 0x1cd   : > { %1752 = vmatpush1.bf16.msra.mxu1 %v3117_v9 }
 0x1ce   : > { %1753 = vmatprep.subr.bf16.mxu1 %v3125_v12  ;;  %1567 = vmatpush2.bf16.msra.mxu0 %v3174_v49  ;;  %v1264_v12 = vrot.slane %v1259_v10, %v3807_v14 }
 0x1cf   : > { %1568 = vmatprep.subr.bf16.mxu0 %v3182_v52 }
 0x1d1   : > { %1754 = vmatpush1.bf16.msra.mxu1 %v3123_v13 }
 0x1d2   : > { %1755 = vmatprep.subr.bf16.mxu1 %v3131_v18  ;;  %1569 = vmatpush2.bf16.msra.mxu0 %v3180_v53  ;;  %v1268_v18 = vrot.slane %v1259_v10, %v3812_v16  ;;  %v3227_v10 = vld [vmem:[#allocation11 + $0x2e4] ss:$8 sps:$4 sm:$0xff]  }
 0x1d3   : > { %1570 = vmatprep.subr.bf16.mxu0 %v3188_v56 }
 0x1d5   : > { %1756 = vmatpush1.bf16.msra.mxu1 %v3129_v19 }
 0x1d6   : > { %1757 = vmatprep.subr.bf16.mxu1 %v3137_v22  ;;  %1571 = vmatpush2.bf16.msra.mxu0 %v3186_v1  ;;  %v3203_v1 = vld [vmem:[#allocation11 + $0x264] ss:$8 sps:$4 sm:$0xff]  }
 0x1d7   : > { %1572 = vmatprep.subr.bf16.mxu0 %v3194_v58  ;;  %v3206_v58 = vld [vmem:[#allocation11 + $0x254] ss:$8 sps:$4 sm:$0xff]  }
 0x1d9   : > { %1758 = vmatpush1.bf16.msra.mxu1 %v3135_v23 }
 0x1da   : > { %1759 = vmatprep.subr.bf16.mxu1 %v3143_v26  ;;  %1573 = vmatpush2.bf16.msra.mxu0 %v3192_v60  ;;  %v3209_v60 = vld [vmem:[#allocation11 + $0x244] ss:$8 sps:$4 sm:$0xff]  }
 0x1db   : > { %1574 = vmatprep.subr.bf16.mxu0 %v3197_v61  ;;  %v3207_v61 = vld [vmem:[#allocation11 + $0x240] ss:$8 sps:$4 sm:$0xff]  }
 0x1dd   : > { %1760 = vmatpush1.bf16.msra.mxu1 %v3141_v27 }
 0x1de   : > { %1761 = vmatprep.subr.bf16.mxu1 %v3149_v30  ;;  %1575 = vmatpush2.bf16.msra.mxu0 %v3195_v62  ;;  %v3212_v62 = vld [vmem:[#allocation11 + $0x234] ss:$8 sps:$4 sm:$0xff]  }
 0x1df   : > { %1989 = vmatprep.subr.bf16.mxu0 %v3200_v63  ;;  %v3210_v63 = vld [vmem:[#allocation11 + $0x230] ss:$8 sps:$4 sm:$0xff]  }
 0x1e1   : > { %1762 = vmatpush2.bf16.msra.mxu1 %v3147_v31 }
 0x1e2   : > { %1763 = vmatprep.subr.bf16.mxu1 %v3155_v34 }
 0x1e5   : > { %1764 = vmatpush2.bf16.msra.mxu1 %v3153_v35 }
 0x1e6   : > { %1765 = vmatprep.subr.bf16.mxu1 %v3161_v38 }
 0x1e9   : > { %1766 = vmatpush2.bf16.msra.mxu1 %v3159_v39 }
 0x1ea   : > { %1767 = vmatprep.subr.bf16.mxu1 %v3167_v42 }
 0x1ed   : > { %1768 = vmatpush2.bf16.msra.mxu1 %v3165_v43 }
 0x1ee   : > { %1769 = vmatprep.subr.bf16.mxu1 %v3173_v46 }
 0x1f1   : > { %1770 = vmatpush2.bf16.msra.mxu1 %v3171_v47 }
 0x1f2   : > { %1771 = vmatprep.subr.bf16.mxu1 %v3179_v50 }
 0x1f5   : > { %1772 = vmatpush2.bf16.msra.mxu1 %v3177_v51 }
 0x1f6   : > { %1773 = vmatprep.subr.bf16.mxu1 %v3185_v55 }
 0x1f9   : > { %1774 = vmatpush2.bf16.msra.mxu1 %v3183_v54  ;;  %v3198_v54 = vld [vmem:[#allocation11 + $0x270] ss:$8 sps:$4 sm:$0xff]  }
 0x1fa   : > { %1775 = vmatprep.subr.bf16.mxu1 %v3191_v57  ;;  %v3201_v57 = vld [vmem:[#allocation11 + $0x260] ss:$8 sps:$4 sm:$0xff]  }
 0x1fd   : > { %1776 = vmatpush2.bf16.msra.mxu1 %v3189_v59  ;;  %v3204_v59 = vld [vmem:[#allocation11 + $0x250] ss:$8 sps:$4 sm:$0xff]  }
 0x260   : > { %v988_v2 = vpop.f32.mrf.mxu1  ;;  %v1109_v3 = vpop.f32.mrf.mxu0 }
 0x261   : > { %v1110_v11 = vadd.f32 %v1109_v3, %v988_v2  ;;  %v3215_v2 = vld [vmem:[#allocation11 + $0x224] ss:$8 sps:$4 sm:$0xff]   ;;  %v3213_v3 = vld [vmem:[#allocation11 + $0x220] ss:$8 sps:$4 sm:$0xff]  }
 0x262   : > { %v990_v4 = vpop.f32.mrf.mxu1  ;;  %v1111_v5 = vpop.f32.mrf.mxu0 }
 0x263   : > { %v1112_v15 = vadd.f32 %v1111_v5, %v990_v4  ;;  %v3218_v4 = vld [vmem:[#allocation11 + $0x214] ss:$8 sps:$4 sm:$0xff]   ;;  %v3216_v5 = vld [vmem:[#allocation11 + $0x210] ss:$8 sps:$4 sm:$0xff]  }
 0x264   : > { %v992_v6 = vpop.f32.mrf.mxu1  ;;  %v1113_v7 = vpop.f32.mrf.mxu0 }
 0x265   : > { %v3221_v6 = vld [vmem:[#allocation11 + $0x204] ss:$8 sps:$4 sm:$0xff]   ;;  %v3219_v7 = vld [vmem:[#allocation11 + $0x200] ss:$8 sps:$4 sm:$0xff]  }
 0x266   : > { %v993_v8 = vpop.f32.mrf.mxu1  ;;  %v1114_v9 = vpop.f32.mrf.mxu0 }
 0x267   : > { %v3224_v8 = vld [vmem:[#allocation11 + $0x2f4] ss:$8 sps:$4 sm:$0xff]   ;;  %v3222_v9 = vld [vmem:[#allocation11 + $0x2f0] ss:$8 sps:$4 sm:$0xff]  }
 0x280   : > { %v1250_v13 = vpop.f32.mrf.mxu1 }
 0x281   : > { %v1257_v17 = vadd.f32 %v1250_v13, %v1110_v11  ;;  %v3225_v11 = vld [vmem:[#allocation11 + $0x2e0] ss:$8 sps:$4 sm:$0xff]   ;;  %v3228_v13 = vld [vmem:[#allocation11 + $0x2d0] ss:$8 sps:$4 sm:$0xff]  }
 0x282   : > { %v1252_v19 = vpop.f32.mrf.mxu1 }
 0x283   : > { %v1271_v20 = vadd.f32 %v1264_v12, %v1257_v17  ;;  %v1258_v21 = vadd.f32 %v1252_v19, %v1112_v15  ;;  %v3230_v12 = vld [vmem:[#allocation11 + $0x2d4] ss:$8 sps:$4 sm:$0xff]   ;;  %v3233_v15 = vld [vmem:[#allocation11 + $0x2c4] ss:$8 sps:$4 sm:$0xff]   ;;  %v3231_v17 = vld [vmem:[#allocation11 + $0x2c0] ss:$8 sps:$4 sm:$0xff]  }
 0x284   : > { %v1254_v22 = vpop.f32.mrf.mxu1  ;;  %v3234_v19 = vld [vmem:[#allocation11 + $0x2b0] ss:$8 sps:$4 sm:$0xff]  }
 0x285   : > { %v2641_v23 = vmul.f32 -1.442695, %v1271_v20  ;;  %v1272_v24 = vadd.f32 %v1268_v18, %v1258_v21  ;;  %v3236_v18 = vld [vmem:[#allocation11 + $0x2b4] ss:$8 sps:$4 sm:$0xff]   ;;  %v3237_v21 = vld [vmem:[#allocation11 + $0x2a0] ss:$8 sps:$4 sm:$0xff]  }
 0x286   : > { %v1255_v25 = vpop.f32.mrf.mxu1  ;;  %v3242_v22 = vld [vmem:[#allocation11 + $0x294] ss:$8 sps:$4 sm:$0xff]  }
 0x287   : > { %3270 = vpow2.f32 %v2641_v23  ;;  %v2642_v26 = vmul.f32 -1.442695, %v1272_v24  ;;  %v3240_v23 = vld [vmem:[#allocation11 + $0x290] ss:$8 sps:$4 sm:$0xff]  }
 0x289   : > { %3272 = vpow2.f32 %v2642_v26  ;;  %v3243_v26 = vld [vmem:[#allocation11 + $0x280] ss:$8 sps:$4 sm:$0xff]  }
 0x294   : > { %v3271_v27 = vpop.eup %3270 }
 0x295   : > { %v1279_v28 = vadd.f32 1.0, %v3271_v27 }
 0x296   : > { %v3273_v29 = vpop.eup %3272 }
 0x297   : > { %3274 = vrcp.f32 %v1279_v28  ;;  %v1280_v30 = vadd.f32 1.0, %v3273_v29  ;;  %v3246_v29 = vld [vmem:[#allocation13 + $0x78] sm:$0xff]  }
 0x298   : > { %2764 = vmatprep.subr.bf16.mxu1 %v3246_v29  ;;  %v2238_v29 = vld [vmem:[#allocation14 + $0x8] sm:$0xff] }
 0x299   : > { %3276 = vrcp.f32 %v1280_v30  ;;  %v3247_v30 = vld [vmem:[#allocation13 + $0x38] sm:$0xff]  }
 0x2a4   : > { %v3275_v31 = vpop.eup %3274 }
 0x2a5   : > { %v1285_v32 = vmul.f32 %v3275_v31, %v1271_v20  ;;  %v3239_v20 = vld [vmem:[#allocation11 + $0x2a4] ss:$8 sps:$4 sm:$0xff]   ;;  %v3248_v31 = vld [vmem:[#allocation13 + $0x70] sm:$0xff]  }
 0x2a6   : > { %v3277_v33 = vpop.eup %3276 }
 0x2a7   : > { %v1289_v34 = vrot.slane %v1285_v32, 7  ;;  %v1286_v35 = vmul.f32 %v3277_v33, %v1272_v24  ;;  %v3245_v24 = vld [vmem:[#allocation11 + $0x284] ss:$8 sps:$4 sm:$0xff]   ;;  %v3249_v32 = vld [vmem:[#allocation13 + $0x30] sm:$0xff]  }
 0x2a8   : > { %v3250_v33 = vld [vmem:[#allocation13 + $0x68] sm:$0xff]  }
 0x2a9   : > { %1293 = vst [vmem:[#allocation4] sm:$0x1e] %v1289_v34  ;;  %v1290_v36 = vrot.slane %v1286_v35, 7  ;;  %v3251_v34 = vld [vmem:[#allocation13 + $0x28] sm:$0xff]   ;;  %v3252_v35 = vld [vmem:[#allocation13 + $0x60] sm:$0xff]  }
 0x2ab   : > { %1294 = vst [vmem:[#allocation4 + $0x8] sm:$0x1e] %v1290_v36  ;;  %v3253_v36 = vld [vmem:[#allocation13 + $0x20] sm:$0xff]  }
 0x2b0   : > { %v1331_v37 = vld [vmem:[#allocation4] sm:$0x1e] }
 0x2b1   : > { %v1295_v38 = vld [vmem:[#allocation4] sm:$0xf]  ;;  %v1333_v39 = vpack.c.bf16 %v1331_v37, %v1331_v37  ;;  %v3254_v37 = vld [vmem:[#allocation13 + $0x58] sm:$0xff]  }
 0x2b2   : > { %v1296_v40 = vld [vmem:[#allocation4 + $0x8] sm:$0xf]  ;;  %v1297_v45 = vpack.c.bf16 %v1295_v38, %v1295_v38  ;;  %v1786_v25 = vld [vmem:[#allocation4] sm:$0x3c]  ;;  %v3255_v38 = vld [vmem:[#allocation13 + $0x18] sm:$0xff]  }
 0x2b3   : > { %v1332_v41 = vld [vmem:[#allocation4 + $0x8] sm:$0x1e]  ;;  %v1298_v42 = vpack.c.bf16 %v1296_v40, %v1296_v40  ;;  %v1371_v44 = vshll.u32 %v1333_v39, 16  ;;  %v1369_v52 = vshrl.u32 %v1333_v39, 16  ;;  %v1788_v27 = vpack.c.bf16 %v1786_v25, %v1786_v25  ;;  %v3256_v39 = vld [vmem:[#allocation13 + $0x50] sm:$0xff]  }
 0x2b4   : > { %v1334_v43 = vpack.c.bf16 %v1332_v41, %v1332_v41  ;;  %v1787_v46 = vld [vmem:[#allocation4 + $0x8] sm:$0x3c]  ;;  %v3257_v40 = vld [vmem:[#allocation13 + $0x10] sm:$0xff]  }
 0x2b5   : > { %1777 = vmatprep.mubr.bf16.mxu1 %v1298_v42  ;;  %v1373_v48 = vrot.slane %v1371_v44, 1  ;;  %v1789_v51 = vpack.c.bf16 %v1787_v46, %v1787_v46  ;;  %v1825_v28 = vrot.slane %v1788_v27, 1  ;;  %v3258_v41 = vld [vmem:[#allocation13 + $0x48] sm:$0xff]   ;;  %v3261_v44 = vld [vmem:[#allocation13] sm:$0xff]   ;;  %v3827_v46 = vld [vmem:[#allocation14 + $0x70] sm:$0xff] }
 0x2b6   : > { %v1378_v47 = vshll.u32 %v1334_v43, 16  ;;  %1778 = vmatmul.mubr.bf16.vlgmr.msra.gmra.mxu1 %v1297_v45  ;;  %v1376_v49 = vshrl.u32 %v1334_v43, 16  ;;  %v3259_v42 = vld [vmem:[#allocation13 + $0x8] sm:$0xff]   ;;  %v3260_v43 = vld [vmem:[#allocation13 + $0x40] sm:$0xff]   ;;  %v3824_v45 = vld [vmem:[#allocation14 + $0x78] sm:$0xff] }
 0x2b7   : > { %v1374_v55 = vor.u32 %v1373_v48, %v1369_v52  ;;  %v1826_v56 = vrot.slane %v1789_v51, 1  ;;  %2765 = vmatpush3.bf16.msra.mxu1 %v3247_v30  ;;  %v3835_v48 = vld [vmem:[#allocation14 + $0x60] sm:$0xff]  ;;  %v3847_v51 = vld [vmem:[#allocation14 + $0x48] sm:$0xff]  ;;  %v2240_v27 = vld [vmem:[#allocation14 + $0x18] sm:$0xff] }
 0x2b8   : > { %v1380_v50 = vrot.slane %v1378_v47, 1  ;;  %2766 = vmatprep.subr.bf16.mxu1 %v3248_v31  ;;  %v3831_v47 = vld [vmem:[#allocation14 + $0x68] sm:$0xff]  ;;  %v2237_v30 = vld [vmem:[#allocation14] sm:$0xff] }
 0x2ba   : > { %v1381_v53 = vor.u32 %v1380_v50, %v1376_v49  ;;  %v3839_v49 = vld [vmem:[#allocation14 + $0x58] sm:$0xff]  ;;  %v3843_v50 = vld [vmem:[#allocation14 + $0x50] sm:$0xff] }
 0x2bb   : > { %2767 = vmatpush3.bf16.msra.mxu1 %v3249_v32  ;;  %v2741_v32 = vld [vmem:[%s3954_s8] ss:$0 sm:$0xff] }
 0x2bc   : > { %1576 = vmatprep.mubr.bf16.mxu0 %v1381_v53  ;;  %2768 = vmatprep.subr.bf16.mxu1 %v3250_v33  ;;  %v3851_v53 = vld [vmem:[#allocation14 + $0x40] sm:$0xff] }
 0x2bd   : > { %1577 = vmatmul.mubr.bf16.vlgmr.msra.gmra.mxu0 %v1374_v55  ;;  %v3855_v55 = vld [vmem:[#allocation14 + $0x38] sm:$0xff] }
 0x2be   : > { %1990 = vmatpush1.bf16.msra.mxu0 %v3198_v54  ;;  %2021 = vmatprep.mubr.bf16.mxu0 %v1826_v56  ;;  %v3859_v56 = vld [vmem:[#allocation14 + $0x30] sm:$0xff] }
 0x2bf   : > { %1991 = vmatprep.subr.bf16.mxu0 %v3203_v1  ;;  %2769 = vmatpush3.bf16.msra.mxu1 %v3251_v34 }
 0x2c0   : > { %2770 = vmatprep.subr.bf16.mxu1 %v3252_v35 }
 0x2c2   : > { %1992 = vmatpush1.bf16.msra.mxu0 %v3201_v57 }
 0x2c3   : > { %1993 = vmatprep.subr.bf16.mxu0 %v3206_v58  ;;  %2771 = vmatpush3.bf16.msra.mxu1 %v3253_v36 }
 0x2c4   : > { %2772 = vmatprep.subr.bf16.mxu1 %v3254_v37 }
 0x2c6   : > { %1994 = vmatpush1.bf16.msra.mxu0 %v3204_v59  ;;  %v2242_v59 = vld [vmem:[#allocation14 + $0x28] sm:$0xff] }
 0x2c7   : > { %1995 = vmatprep.subr.bf16.mxu0 %v3209_v60  ;;  %2773 = vmatpush3.bf16.msra.mxu1 %v3255_v38 }
 0x2c8   : > { %2774 = vmatprep.subr.bf16.mxu1 %v3256_v39 }
 0x2ca   : > { %1996 = vmatpush1.bf16.msra.mxu0 %v3207_v61 }
 0x2cb   : > { %1997 = vmatprep.subr.bf16.mxu0 %v3212_v62  ;;  %2775 = vmatpush3.bf16.msra.mxu1 %v3257_v40  ;;  %v2241_v62 = vld [vmem:[#allocation14 + $0x20] sm:$0xff] }
 0x2cc   : > { %2776 = vmatprep.subr.bf16.mxu1 %v3258_v41 }
 0x2ce   : > { %1998 = vmatpush1.bf16.msra.mxu0 %v3210_v63 }
 0x2cf   : > { %1999 = vmatprep.subr.bf16.mxu0 %v3215_v2  ;;  %2777 = vmatpush3.bf16.msra.mxu1 %v3259_v42 }
 0x2d0   : > { %2778 = vmatprep.subr.bf16.mxu1 %v3260_v43 }
 0x2d2   : > { %2000 = vmatpush1.bf16.msra.mxu0 %v3213_v3  ;;  %v2032_v3 = vld [vmem:[%s3952_s6] sm:$0x3] }
 0x2d3   : > { %2001 = vmatprep.subr.bf16.mxu0 %v3218_v4  ;;  %2779 = vmatpush3.bf16.msra.mxu1 %v3261_v44  ;;  %v2037_v4 = vrot.slane %v2032_v3, %v3807_v14 }
 0x2d4   : > { %2820 = vmatprep.subr.mxu1 %v3534_v0 }
 0x2d6   : > { %2002 = vmatpush1.bf16.msra.mxu0 %v3216_v5 }
 0x2d7   : > { %2003 = vmatprep.subr.bf16.mxu0 %v3221_v6 }
 0x2da   : > { %2004 = vmatpush1.bf16.msra.mxu0 %v3219_v7 }
 0x2db   : > { %2005 = vmatprep.subr.bf16.mxu0 %v3224_v8  ;;  %v2041_v8 = vrot.slane %v2032_v3, %v3812_v16 }
 0x2de   : > { %2006 = vmatpush2.bf16.msra.mxu0 %v3222_v9 }
 0x2df   : > { %2007 = vmatprep.subr.bf16.mxu0 %v3227_v10 }
 0x2e2   : > { %2008 = vmatpush2.bf16.msra.mxu0 %v3225_v11 }
 0x2e3   : > { %2009 = vmatprep.subr.bf16.mxu0 %v3230_v12 }
 0x2e6   : > { %2010 = vmatpush2.bf16.msra.mxu0 %v3228_v13 }
 0x2e7   : > { %2011 = vmatprep.subr.bf16.mxu0 %v3233_v15 }
 0x2ea   : > { %2012 = vmatpush2.bf16.msra.mxu0 %v3231_v17 }
 0x2eb   : > { %2013 = vmatprep.subr.bf16.mxu0 %v3236_v18 }
 0x2ee   : > { %2014 = vmatpush2.bf16.msra.mxu0 %v3234_v19 }
 0x2ef   : > { %2015 = vmatprep.subr.bf16.mxu0 %v3239_v20 }
 0x2f2   : > { %2016 = vmatpush2.bf16.msra.mxu0 %v3237_v21 }
 0x2f3   : > { %2017 = vmatprep.subr.bf16.mxu0 %v3242_v22 }
 0x2f6   : > { %2018 = vmatpush2.bf16.msra.mxu0 %v3240_v23 }
 0x2f7   : > { %2019 = vmatprep.subr.bf16.mxu0 %v3245_v24 }
 0x2fa   : > { %2020 = vmatpush2.bf16.msra.mxu0 %v3243_v26 }
 0x2fb   : > { %2855 = vmatprep.subr.mxu0 %v3534_v0 }
 0x2fd   : > { %2022 = vmatmul.mubr.bf16.vlgmr.msra.gmra.mxu0 %v1825_v28  ;;  %v2239_v28 = vld [vmem:[#allocation14 + $0x10] sm:$0xff] }
 0x2fe   : > { %2856 = vmatpush3.msra.mxu0 %v3824_v45  ;;  %2887 = vmatprep.mubr.msk.f32.mxu0 %vm3536_vm3, %v3534_v0 }
 0x2ff   : > { %2857 = vmatprep.subr.mxu0 %v3534_v0 }
 0x300   : > { %2858 = vmatpush3.msra.mxu0 %v3827_v46 }
 0x301   : > { %2859 = vmatprep.subr.mxu0 %v3534_v0 }
 0x302   : > { %2860 = vmatpush3.msra.mxu0 %v3831_v47 }
 0x303   : > { %2861 = vmatprep.subr.mxu0 %v3534_v0 }
 0x304   : > { %2862 = vmatpush3.msra.mxu0 %v3835_v48 }
 0x305   : > { %2863 = vmatprep.subr.mxu0 %v3534_v0 }
 0x306   : > { %2864 = vmatpush3.msra.mxu0 %v3839_v49 }
 0x307   : > { %2865 = vmatprep.subr.mxu0 %v3534_v0 }
 0x308   : > { %2866 = vmatpush3.msra.mxu0 %v3843_v50 }
 0x309   : > { %2867 = vmatprep.subr.mxu0 %v3534_v0 }
 0x30a   : > { %2868 = vmatpush3.msra.mxu0 %v3847_v51 }
 0x30b   : > { %2869 = vmatprep.subr.mxu0 %v3534_v0 }
 0x30c   : > { %2870 = vmatpush3.msra.mxu0 %v3851_v53 }
 0x30d   : > { %2871 = vmatprep.subr.mxu0 %v3534_v0 }
 0x30e   : > { %2872 = vmatpush3.msra.mxu0 %v3855_v55 }
 0x30f   : > { %2873 = vmatprep.subr.mxu0 %v3534_v0 }
 0x310   : > { %2874 = vmatpush3.msra.mxu0 %v3859_v56 }
 0x311   : > { %2875 = vmatprep.subr.mxu0 %v3534_v0 }
 0x312   : > { %2876 = vmatpush3.msra.mxu0 %v2242_v59 }
 0x313   : > { %2877 = vmatprep.subr.mxu0 %v3534_v0 }
 0x314   : > { %2878 = vmatpush3.msra.mxu0 %v2241_v62 }
 0x315   : > { %2879 = vmatprep.subr.mxu0 %v3534_v0 }
 0x316   : > { %2880 = vmatpush3.msra.mxu0 %v2240_v27 }
 0x317   : > { %2881 = vmatprep.subr.mxu0 %v3534_v0 }
 0x318   : > { %2882 = vmatpush3.msra.mxu0 %v2239_v28 }
 0x319   : > { %2883 = vmatprep.subr.mxu0 %v3534_v0 }
 0x31a   : > { %2884 = vmatpush3.msra.mxu0 %v2238_v29 }
 0x31b   : > { %2885 = vmatprep.subr.mxu0 %v3534_v0 }
 0x31c   : > { %2886 = vmatpush3.msra.mxu0 %v2237_v30 }
 0x376   : > { %v1779_v52 = vpop.f32.mrf.mxu1 }
 0x378   : > { %v1781_v54 = vpop.f32.mrf.mxu1 }
 0x37a   : > { %v1783_v1 = vpop.f32.mrf.mxu1 }
 0x37c   : > { %v1784_v58 = vpop.f32.mrf.mxu1 }
 0x37d   : > { %v1578_v57 = vpop.f32.mrf.mxu0 }
 0x37e   : > { %v1780_v60 = vadd.f32 %v1779_v52, %v1578_v57 }
 0x37f   : > { %v1580_v61 = vpop.f32.mrf.mxu0 }
 0x380   : > { %v1782_v6 = vadd.f32 %v1781_v54, %v1580_v61 }
 0x381   : > { %v1582_v63 = vpop.f32.mrf.mxu0 }
 0x383   : > { %v1583_v2 = vpop.f32.mrf.mxu0 }
 0x3bd   : > { %v2023_v5 = vpop.f32.mrf.mxu0 }
 0x3be   : > { %v2030_v7 = vadd.f32 %v2023_v5, %v1780_v60 }
 0x3bf   : > { %v2025_v9 = vpop.f32.mrf.mxu0 }
 0x3c0   : > { %v2044_v10 = vadd.f32 %v2037_v4, %v2030_v7  ;;  %v2031_v11 = vadd.f32 %v2025_v9, %v1782_v6 }
 0x3c1   : > { %v2027_v12 = vpop.f32.mrf.mxu0 }
 0x3c2   : > { %v2739_v13 = vmul.f32 -1.442695, %v2044_v10  ;;  %v2045_v15 = vadd.f32 %v2041_v8, %v2031_v11 }
 0x3c3   : > { %v2028_v17 = vpop.f32.mrf.mxu0 }
 0x3c4   : > { %3278 = vpow2.f32 %v2739_v13  ;;  %v2740_v18 = vmul.f32 -1.442695, %v2045_v15 }
 0x3c6   : > { %3280 = vpow2.f32 %v2740_v18 }
 0x3d1   : > { %v3279_v19 = vpop.eup %3278 }
 0x3d2   : > { %v2052_v20 = vadd.f32 1.0, %v3279_v19 }
 0x3d3   : > { %v3281_v21 = vpop.eup %3280 }
 0x3d4   : > { %3282 = vrcp.f32 %v2052_v20  ;;  %v2053_v14 = vadd.f32 1.0, %v3281_v21 }
 0x3d6   : > { %3284 = vrcp.f32 %v2053_v14 }
 0x3e1   : > { %v3283_v22 = vpop.eup %3282 }
 0x3e2   : > { %v2058_v24 = vmul.f32 %v3283_v22, %v2044_v10 }
 0x3e3   : > { %v3285_v23 = vpop.eup %3284 }
 0x3e4   : > { %v2059_v16 = vmul.f32 %v3285_v23, %v2045_v15  ;;  %v2060_v26 = vpack.c.bf16 %v2058_v24, %v2058_v24 }
 0x3e6   : > { %v2061_v25 = vpack.c.bf16 %v2059_v16, %v2059_v16 }
 0x3e8   : > { %2229 = vmatprep.mubr.bf16.mxu1 %v2061_v25 }
 0x3e9   : > { %2230 = vmatmul.mubr.bf16.vlgmr.msra.gmra.mxu1 %v2060_v26 }
 0x3ea   : > { %2821 = vmatpush3.msra.mxu1 %v3824_v45  ;;  %2852 = vmatprep.mubr.msk.f32.mxu1 %vm3536_vm3, %v3534_v0  ;;  %v2758_v45 = vld [vmem:[%s3956_s10] ss:$0 sm:$0xff] }
 0x3eb   : > { %2822 = vmatprep.subr.mxu1 %v3534_v0 }
 0x3ec   : > { %2823 = vmatpush3.msra.mxu1 %v3827_v46 }
 0x3ed   : > { %2824 = vmatprep.subr.mxu1 %v3534_v0 }
 0x3ee   : > { %2825 = vmatpush3.msra.mxu1 %v3831_v47  ;;  %v2759_v47 = vld [vmem:[%s3957_s11] ss:$0 sm:$0xff] }
 0x3ef   : > { %2826 = vmatprep.subr.mxu1 %v3534_v0 }
 0x3f0   : > { %2827 = vmatpush3.msra.mxu1 %v3835_v48 }
 0x3f1   : > { %2828 = vmatprep.subr.mxu1 %v3534_v0 }
 0x3f2   : > { %2829 = vmatpush3.msra.mxu1 %v3839_v49 }
 0x3f3   : > { %2830 = vmatprep.subr.mxu1 %v3534_v0 }
 0x3f4   : > { %2831 = vmatpush3.msra.mxu1 %v3843_v50 }
 0x3f5   : > { %2832 = vmatprep.subr.mxu1 %v3534_v0 }
 0x3f6   : > { %2833 = vmatpush3.msra.mxu1 %v3847_v51 }
 0x3f7   : > { %2834 = vmatprep.subr.mxu1 %v3534_v0 }
 0x3f8   : > { %2835 = vmatpush3.msra.mxu1 %v3851_v53 }
 0x3f9   : > { %2836 = vmatprep.subr.mxu1 %v3534_v0 }
 0x3fa   : > { %2837 = vmatpush3.msra.mxu1 %v3855_v55 }
 0x3fb   : > { %2838 = vmatprep.subr.mxu1 %v3534_v0 }
 0x3fc   : > { %2839 = vmatpush3.msra.mxu1 %v3859_v56 }
 0x3fd   : > { %2840 = vmatprep.subr.mxu1 %v3534_v0 }
 0x3fe   : > { %2841 = vmatpush3.msra.mxu1 %v2242_v59 }
 0x3ff   : > { %2842 = vmatprep.subr.mxu1 %v3534_v0 }
 0x400   : > { %2843 = vmatpush3.msra.mxu1 %v2241_v62 }
 0x401   : > { %2844 = vmatprep.subr.mxu1 %v3534_v0 }
 0x402   : > { %2845 = vmatpush3.msra.mxu1 %v2240_v27 }
 0x403   : > { %2846 = vmatprep.subr.mxu1 %v3534_v0 }
 0x404   : > { %2847 = vmatpush3.msra.mxu1 %v2239_v28 }
 0x405   : > { %2848 = vmatprep.subr.mxu1 %v3534_v0 }
 0x406   : > { %2849 = vmatpush3.msra.mxu1 %v2238_v29 }
 0x407   : > { %2850 = vmatprep.subr.mxu1 %v3534_v0 }
 0x408   : > { %2851 = vmatpush3.msra.mxu1 %v2237_v30 }
 0x4a9   : > { %v2780_v31 = vpop.f32.mrf.mxu1 }
 0x4ab   : > { %v2781_v33 = vpop.f32.mrf.mxu1 }
 0x4ac   : > { %v2782_v34 = vadd.f32 %v2781_v33, %v2780_v31 }
 0x4ad   : > { %v2783_v35 = vpop.f32.mrf.mxu1 }
 0x4ae   : > { %v2232_v36 = vadd.f32 %v2782_v34, %v2741_v32 }
 0x4af   : > { %v2784_v37 = vpop.f32.mrf.mxu1 }
 0x4b0   : > { %2853 = vmatmul.mubr.f32.vlgmr.msra.gmra.mxu1 %v2232_v36 }
 0x570   : > { %v2319_v38 = vpop.f32.mrf.mxu1 }
 0x571   : > { %v2323_v39 = vsub.f32 %v2232_v36, %v2319_v38 }
 0x572   : > { %v2854_v40 = vpop.f32.mrf.mxu1 }
 0x573   : > { %v2324_v41 = vmul.f32 %v2323_v39, %v2323_v39 }
 0x575   : > { %2888 = vmatmul.mubr.f32.vlgmr.msra.gmra.mxu0 %v2324_v41 }
 0x635   : > { %v2391_v42 = vpop.f32.mrf.mxu0 }
 0x636   : > { %v2392_v0 = vadd.f32 1e-05, %v2391_v42 }
 0x637   : > { %v2889_v43 = vpop.f32.mrf.mxu0 }
 0x638   : > { %3286 = vrsqrt.f32 %v2392_v0 }
 0x645   : > { %v3287_v44 = vpop.eup %3286 }
 0x646   : > { %v2396_v46 = vmul.f32 %v3287_v44, %v2323_v39 }
 0x648   : > { %v2404_v48 = vmul.f32 %v2758_v45, %v2396_v46 }
 0x64a   : > { %v2412_v49 = vadd.f32 %v2759_v47, %v2404_v48 }
 0x64c   : > { %2413 = vst [vmem:[%s501_s26] sm:$0xf] %v2412_v49 }
 0x64d   : > { %3459 = shalt.err (!%p3456_p1)
}
 0x64e   : > { %s3460_s18 = scalar_lea.hbm %s2426_s28, 64  ;;  %s3464_s1 = scalar_lea.hbm %s3958_s12, 128 }
 0x64f   : > { %p3461_p3 = scmp.ne.s32.totalorder %s2426_s28, %s3460_s18  ;;  %p3465_p6 = scmp.lt.s32.totalorder %s2426_s28, %s3958_s12 }
 0x650   : > { %p3466_p2 = scmp.lt.s32.totalorder %s3464_s1, %s3460_s18 }
 0x651   : > { %p3462_p4 = pnand %p3461_p3, %p3993_p11 }
 0x652   : > { %p3467_p7 = por %p3466_p2, %p3465_p6 }
 0x653   : > { %p3463_p12 = pneg %p3462_p4 }
 0x655   : > { %p3468_p8 = pnand %p3467_p7, %p3463_p12 }
 0x657   : > { %3471 = shalt.err (!%p3468_p8)
}
 0x658   : > { %2912 = dma.vmem_to_hbm [thread:$0]  (%p3993_p11), %s2429_s3, 64, %s2426_s28, %s2415_s15  }
 0x659 PF: > { %s2440_s20 = sand.u32 1, %s3510_s21   ;;  %p3994_p13 = scmp.ne.s32.totalorder %s3983_s30, 0 }
 0x65a   : > { %p3995_p0 = scmp.ge.s32.totalorder %s3522_s24, 2  ;;  %s2441_s26 = scalar_lea.sflag [#allocation7], %s2440_s20 }
 0x65c   : > { %p2935_p5 = pnand %p3995_p0, %p3994_p13 }
 0x65e   : > { %p2936_p9 = pneg %p2935_p5 }
 0x660   : > { %3505 = dma.done.wait (%p2936_p9), %s2441_s26, 64  }
 0x661   : > { %3507 = vsyncadd (%p2936_p9), %s2441_s26, 4294967232  ;;  %s3996_s5 = sld [smem:[#allocation22_spill]]  ;;  %p28_p10 = scmp.ge.s32.totalorder %s3711_s16, 4  }
 0x662   : > { %s3997_s23 = sld [smem:[#allocation23_spill]]  ;;  %s3998_s21 = smov %s3514_s22 }
 0x663   : > { %s4000_s24 = smov %s3711_s16  ;;  %30 = sbr.rel (!%p28_p10) target bundleno = 14 (0xe), region = 142 }
 0x667   : > { %s3999_s22 = smov %s3996_s5 }
 0x668   :  { %2446 = vsyncpa [#allocation6], 1 }
 0x669   :  { %2448 = vsyncpa [#allocation6 + $0x1], 1 }
 0x66a   :  { %2449 = vsyncpa [#allocation9], 1 }
 0x66b   :  { %2450 = vsyncpa [#allocation12], 1 }
 0x66c   :  { %2451 = vsyncpa [#allocation15], 1 }
 0x66d   :  { %2452 = vsyncpa [#allocation7], 1 }
 0x66e   :  { %2454 = vsyncpa [#allocation7 + $0x1], 1 }

</bundles_post_ra>
